<compile_context>
chip_gen: v7x
topology: tpu7x:2x2x1
jax: 0.10.0
libtpu: 0.0.40
codegen_flags: <defaults>
</compile_context>

<pallas_src>
import jax
import jax.numpy as jnp
from jax import lax
from jax.experimental import pallas as pl
from jax.experimental.pallas import tpu as pltpu


def mhsa_forward(x, params):
    """Pallas MHSA forward. x: (B, C, W, H) float32, NCHW."""
    B, C, W, H = x.shape
    N = W * H
    N_pad = ((N + 127) // 128) * 128          # lane-dense key/query extent
    pad = N_pad - N

    # Query-tile size: bounds the (TQ, N) energy/softmax working set in VMEM
    # (matters on v7x: 64 MiB physical / 32 MiB scoped default).
    if N_pad <= 512:
        TQ = N_pad
    else:
        TQ = next(t for t in (512, 384, 256, 128) if N_pad % t == 0)
    NQ = N_pad // TQ

    # ---- parameter / input glue (plain XLA, outside the kernel) ----
    wq = params["wq"].reshape(C, C)
    wk = params["wk"].reshape(C, C)
    wv = params["wv"].reshape(C, C)
    bq = params["bq"].reshape(C)
    bk = params["bk"].reshape(C)
    bv = params["bv"].reshape(C)

    # Stack K/Q/V weights and fold biases in (extra "ones" row appended to x).
    w_kqv = jnp.concatenate([wk, wq, wv], axis=0)                    # (3C, C)
    b_kqv = jnp.concatenate([bk, bq, bv], axis=0)[:, None]           # (3C, 1)
    w_kqv_aug = jnp.concatenate([w_kqv, b_kqv], axis=1)              # (3C, C+1)
    # Transposed q projection: lets the kernel build the energy lhs already in
    # (TQ, C) orientation so every MXU matmul is a plain (M,K)x(K,N) gemm.
    wt_q_aug = jnp.concatenate([wq, bq[:, None]], axis=1).T          # (C+1, C)

    x_flat = x.reshape(B, C, N)
    ones = jnp.ones((B, 1, N), x.dtype)
    x_aug = jnp.concatenate([x_flat, ones], axis=1)                  # (B, C+1, N)
    if pad:
        x_aug = jnp.pad(x_aug, ((0, 0), (0, 0), (0, pad)))           # zero key cols
    x_aug_t = jnp.transpose(x_aug, (0, 2, 1))                        # (B, N_pad, C+1)

    # (1,C,1,H) + (1,C,W,1) -> (C, N) positional table, transposed + padded,
    # pre-cast to bf16 (it feeds an MXU matmul with bf16 operands anyway).
    r = (params["rel_h"] + params["rel_w"]).reshape(C, N)
    r_t = r.T                                                        # (N, C)
    if pad:
        r_t = jnp.pad(r_t, ((0, pad), (0, 0)))
    r_t = r_t.astype(jnp.bfloat16)                                   # (N_pad, C)

    # Additive key-padding mask row: 0 on valid keys, -1e30 on padded ones.
    key_mask = jnp.where(jnp.arange(N_pad) < N, 0.0, -1e30).astype(jnp.float32)
    key_mask = key_mask.reshape(1, N_pad)                            # (1, N_pad)

    def kernel(x_ref, xt_ref, wkqv_ref, wtq_ref, rt_ref, mask_ref, o_ref,
               kqv_ref):
        qi = pl.program_id(1)

        # Fused K/Q/V projection (one (3C,C+1) x (C+1,N) matmul), computed once
        # per batch element and kept resident in bf16 VMEM scratch across the
        # query tiles of that batch element.
        @pl.when(qi == 0)
        def _():
            kqv_ref[...] = jnp.dot(
                wkqv_ref[...], x_ref[...],
                preferred_element_type=jnp.float32).astype(jnp.bfloat16)

        # q for this query tile, already transposed: (TQ, C+1) x (C+1, C)
        q_t = jnp.dot(xt_ref[...], wtq_ref[...],
                      preferred_element_type=jnp.float32)

        # Fused energy (cc + cp in a single MXU pass, K = 2C):
        #   lhs = [q^T | r^T] (TQ, 2C),  rhs = [k ; q] (2C, N_pad)
        lhs = jnp.concatenate([q_t.astype(jnp.bfloat16), rt_ref[...]], axis=1)
        kq = kqv_ref[pl.ds(0, 2 * C), :]                              # bf16
        energy = lax.dot_general(lhs, kq, (((1,), (0,)), ((), ())),
                                 preferred_element_type=jnp.float32)  # (TQ, N_pad)

        if pad:  # additive mask on padded key columns (sublane broadcast add)
            energy = energy + mask_ref[...]

        # softmax over keys (kept in f32; reciprocal runs on the EUP slot)
        m = jnp.max(energy, axis=-1, keepdims=True)
        e = jnp.exp(energy - m)
        s = jnp.sum(e, axis=-1, keepdims=True)
        att = (e * pl.reciprocal(s, approx=True)).astype(jnp.bfloat16)

        # out[c, i] = sum_j v[c, j] * att[i, j]  -> (C, TQ), lane-dense store
        v = kqv_ref[pl.ds(2 * C, C), :]                               # bf16
        out = lax.dot_general(v, att, (((1,), (1,)), ((), ())),
                              preferred_element_type=jnp.float32)
        o_ref[...] = out.astype(o_ref.dtype)

    # VMEM budget: double-buffered I/O blocks + scratch + softmax working set.
    f32, bf16 = 4, 2
    vmem_est = (
        2 * (C + 1) * N_pad * f32       # x_aug block
        + 2 * TQ * (C + 1) * f32        # x_aug^T tile
        + 2 * 3 * C * (C + 1) * f32     # stacked K/Q/V weights
        + 2 * (C + 1) * C * f32         # transposed q weights
        + 2 * TQ * C * bf16             # r^T tile (bf16)
        + 2 * N_pad * f32               # key-pad mask row
        + 2 * C * TQ * f32              # output tile
        + 3 * C * N_pad * bf16          # kqv scratch (bf16)
        + 4 * TQ * N_pad * f32          # energy / exp / att temporaries
    )
    vmem_limit = min(int(1.5 * vmem_est) + (4 << 20), 64 << 20)  # <= v7x physical

    out_flat = pl.pallas_call(
        kernel,
        out_shape=jax.ShapeDtypeStruct((B, C, N_pad), jnp.float32),
        grid=(B, NQ),
        in_specs=[
            pl.BlockSpec((None, C + 1, N_pad), lambda b, qi: (b, 0, 0)),  # x_aug (full)
            pl.BlockSpec((None, TQ, C + 1), lambda b, qi: (b, qi, 0)),    # x_aug^T tile
            pl.BlockSpec((3 * C, C + 1), lambda b, qi: (0, 0)),           # [k;q;v] weights
            pl.BlockSpec((C + 1, C), lambda b, qi: (0, 0)),               # q weights^T
            pl.BlockSpec((TQ, C), lambda b, qi: (qi, 0)),                 # r^T tile (bf16)
            pl.BlockSpec((1, N_pad), lambda b, qi: (0, 0)),               # key-pad mask
        ],
        out_specs=pl.BlockSpec((None, C, TQ), lambda b, qi: (b, 0, qi)),
        scratch_shapes=[pltpu.VMEM((3 * C, N_pad), jnp.bfloat16)],
        compiler_params=pltpu.CompilerParams(
            # qi must be "arbitrary": the kqv scratch is carried across it.
            dimension_semantics=("parallel", "arbitrary"),
            vmem_limit_bytes=vmem_limit,
        ),
    )(x_aug, x_aug_t, w_kqv_aug, wt_q_aug, r_t, key_mask)

    return out_flat[:, :, :N].reshape(B, C, W, H)


def mhsa_reference(x, params):
    """Pure-JAX reference (mirrors the PyTorch forward exactly, all f32)."""
    B, C, W, H = x.shape
    N = W * H
    xf = x.reshape(B, C, N)

    def conv1x1(w, b):
        return jnp.einsum("oc,bcn->bon", w.reshape(C, C), xf) + b.reshape(1, C, 1)

    q = conv1x1(params["wq"], params["bq"])
    k = conv1x1(params["wk"], params["bk"])
    v = conv1x1(params["wv"], params["bv"])

    cc = jnp.einsum("bci,bcj->bij", q, k)
    r = (params["rel_h"] + params["rel_w"]).reshape(C, N)
    cp = jnp.einsum("ci,bcj->bij", r, q)
    att = jax.nn.softmax(cc + cp, axis=-1)
    out = jnp.einsum("bcj,bij->bci", v, att)
    return out.reshape(B, C, W, H)


if __name__ == "__main__":
    # BoTNet-style spatial defaults (14x14 -> N=196) so the pad/mask path is exercised.
    B, C, W, H = 2, 32, 14, 14

    key = jax.random.PRNGKey(0)
    keys = jax.random.split(key, 9)
    params = {
        "wq": jax.random.normal(keys[0], (C, C, 1, 1), jnp.float32) * 0.05,
        "bq": jax.random.normal(keys[1], (C,), jnp.float32) * 0.05,
        "wk": jax.random.normal(keys[2], (C, C, 1, 1), jnp.float32) * 0.05,
        "bk": jax.random.normal(keys[3], (C,), jnp.float32) * 0.05,
        "wv": jax.random.normal(keys[4], (C, C, 1, 1), jnp.float32) * 0.05,
        "bv": jax.random.normal(keys[5], (C,), jnp.float32) * 0.05,
        "rel_h": jax.random.normal(keys[6], (1, C, 1, H), jnp.float32) * 0.1,
        "rel_w": jax.random.normal(keys[7], (1, C, W, 1), jnp.float32) * 0.1,
    }
    x = jax.random.normal(keys[8], (B, C, W, H), jnp.float32)

    out = jax.block_until_ready(mhsa_forward(x, params))
    ref = mhsa_reference(x, params)

    assert out.shape == (B, C, W, H)
    max_err = float(jnp.max(jnp.abs(out - ref)))
    # bf16 MXU operands + approx reciprocal -> looser tolerance vs the f32 reference.
    assert jnp.allclose(out, ref, atol=5e-2, rtol=5e-2), (
        f"mismatch vs reference (max|err|={max_err})")

    print("KERNEL_OK")
</pallas_src>

<mosaic_0001>
module attributes {stable_mosaic.version = 11 : i64} {
  func.func @kernel(%arg0: i32, %arg1: i32, %arg2: memref<1x33x256xf32, #tpu.memory_space<vmem>>, %arg3: memref<1x256x33xf32, #tpu.memory_space<vmem>>, %arg4: memref<96x33xf32, #tpu.memory_space<vmem>>, %arg5: memref<33x32xf32, #tpu.memory_space<vmem>>, %arg6: memref<256x32xbf16, #tpu.memory_space<vmem>>, %arg7: memref<1x256xf32, #tpu.memory_space<vmem>>, %arg8: memref<1x32x256xf32, #tpu.memory_space<vmem>>, %arg9: memref<96x256xbf16, #tpu.memory_space<vmem>>) attributes {dimension_semantics = [#tpu.dimension_semantics<parallel>, #tpu.dimension_semantics<arbitrary>], iteration_bounds = array<i64: 2, 1>, scalar_prefetch = 0 : i64, scratch_operands = 1 : i64, tpu.core_type = #tpu.core_type<tc>, window_params = [{transform_indices = @transform_0, window_bounds = array<i64: 1, 33, 256>}, {transform_indices = @transform_1, window_bounds = array<i64: 1, 256, 33>}, {pipeline_mode = #tpu.pipeline_mode<synchronous>, transform_indices = @transform_2, window_bounds = array<i64: 96, 33>}, {pipeline_mode = #tpu.pipeline_mode<synchronous>, transform_indices = @transform_3, window_bounds = array<i64: 33, 32>}, {transform_indices = @transform_4, window_bounds = array<i64: 256, 32>}, {pipeline_mode = #tpu.pipeline_mode<synchronous>, transform_indices = @transform_5, window_bounds = array<i64: 1, 256>}, {transform_indices = @transform_6, window_bounds = array<i64: 1, 32, 256>}]} {
    %c0_i32 = arith.constant 0 : i32
    %0 = arith.cmpi eq, %arg1, %c0_i32 : i32
    %1 = arith.extui %0 : i1 to i32
    %c0_i32_0 = arith.constant 0 : i32
    %2 = arith.cmpi ne, %1, %c0_i32_0 : i32
    scf.if %2 {
      %c0_19 = arith.constant 0 : index
      %c0_20 = arith.constant 0 : index
      %31 = vector.load %arg4[%c0_19, %c0_20] : memref<96x33xf32, #tpu.memory_space<vmem>>, vector<96x33xf32>
      %c0_21 = arith.constant 0 : index
      %c0_22 = arith.constant 0 : index
      %c0_23 = arith.constant 0 : index
      %32 = vector.load %arg2[%c0_21, %c0_22, %c0_23] : memref<1x33x256xf32, #tpu.memory_space<vmem>>, vector<1x33x256xf32>
      %33 = vector.shape_cast %32 : vector<1x33x256xf32> to vector<33x256xf32>
      %cst_24 = arith.constant dense<0.000000e+00> : vector<96x256xf32>
      %34 = tpu.matmul %31, %33, %cst_24 {dimension_numbers = #tpu.dot_dimension_numbers<[1], [0], [0], [1], [0, 0, 1, 1], [], []>} : vector<96x33xf32>, vector<33x256xf32>, vector<96x256xf32> -> vector<96x256xf32>
      %35 = arith.truncf %34 : vector<96x256xf32> to vector<96x256xbf16>
      %c0_25 = arith.constant 0 : index
      %c0_26 = arith.constant 0 : index
      %36 = vector.load %arg9[%c0_25, %c0_26] : memref<96x256xbf16, #tpu.memory_space<vmem>>, vector<96x256xbf16>
      tpu.vector_store %arg9[%c0_25, %c0_26], %35 {strides = array<i32>} : memref<96x256xbf16, #tpu.memory_space<vmem>>, vector<96x256xbf16>,
    } else {
    }
    %c0 = arith.constant 0 : index
    %c0_1 = arith.constant 0 : index
    %c0_2 = arith.constant 0 : index
    %3 = vector.load %arg3[%c0, %c0_1, %c0_2] : memref<1x256x33xf32, #tpu.memory_space<vmem>>, vector<1x256x33xf32>
    %4 = vector.shape_cast %3 : vector<1x256x33xf32> to vector<256x33xf32>
    %c0_3 = arith.constant 0 : index
    %c0_4 = arith.constant 0 : index
    %5 = vector.load %arg5[%c0_3, %c0_4] : memref<33x32xf32, #tpu.memory_space<vmem>>, vector<33x32xf32>
    %cst = arith.constant dense<0.000000e+00> : vector<256x32xf32>
    %6 = tpu.matmul %4, %5, %cst {dimension_numbers = #tpu.dot_dimension_numbers<[1], [0], [0], [1], [0, 0, 1, 1], [], []>} : vector<256x33xf32>, vector<33x32xf32>, vector<256x32xf32> -> vector<256x32xf32>
    %7 = arith.truncf %6 : vector<256x32xf32> to vector<256x32xbf16>
    %c0_5 = arith.constant 0 : index
    %c0_6 = arith.constant 0 : index
    %8 = vector.load %arg6[%c0_5, %c0_6] : memref<256x32xbf16, #tpu.memory_space<vmem>>, vector<256x32xbf16>
    %9 = tpu.concatenate %7, %8 in 1 : vector<256x32xbf16>, vector<256x32xbf16> -> vector<256x64xbf16>
    %c0_7 = arith.constant 0 : index
    %c0_8 = arith.constant 0 : index
    %10 = vector.load %arg9[%c0_7, %c0_8] : memref<96x256xbf16, #tpu.memory_space<vmem>>, vector<64x256xbf16>
    %cst_9 = arith.constant dense<0.000000e+00> : vector<256x256xf32>
    %11 = tpu.matmul %9, %10, %cst_9 {dimension_numbers = #tpu.dot_dimension_numbers<[1], [0], [0], [1], [0, 0, 1, 1], [], []>} : vector<256x64xbf16>, vector<64x256xbf16>, vector<256x256xf32> -> vector<256x256xf32>
    %c0_10 = arith.constant 0 : index
    %c0_11 = arith.constant 0 : index
    %12 = vector.load %arg7[%c0_10, %c0_11] : memref<1x256xf32, #tpu.memory_space<vmem>>, vector<1x256xf32>
    %13 = vector.broadcast %12 : vector<1x256xf32> to vector<256x256xf32>
    %14 = arith.addf %11, %13 : vector<256x256xf32>
    %cst_12 = arith.constant dense<0xFF800000> : vector<256xf32>
    %15 = vector.multi_reduction <maximumf>, %14, %cst_12 [1] : vector<256x256xf32> to vector<256xf32>
    %16 = vector.shape_cast %15 : vector<256xf32> to vector<256x1xf32>
    %17 = vector.broadcast %16 : vector<256x1xf32> to vector<256x256xf32>
    %18 = arith.subf %14, %17 : vector<256x256xf32>
    %19 = math.exp %18 : vector<256x256xf32>
    %cst_13 = arith.constant dense<0.000000e+00> : vector<256xf32>
    %20 = vector.multi_reduction <add>, %19, %cst_13 [1] : vector<256x256xf32> to vector<256xf32>
    %21 = vector.shape_cast %20 : vector<256xf32> to vector<256x1xf32>
    %22 = tpu.reciprocal %21 {approx = true} : vector<256x1xf32> -> vector<256x1xf32>
    %23 = vector.broadcast %22 : vector<256x1xf32> to vector<256x256xf32>
    %24 = arith.mulf %19, %23 : vector<256x256xf32>
    %25 = arith.truncf %24 : vector<256x256xf32> to vector<256x256xbf16>
    %c64 = arith.constant 64 : index
    %c0_14 = arith.constant 0 : index
    %26 = vector.load %arg9[%c64, %c0_14] : memref<96x256xbf16, #tpu.memory_space<vmem>>, vector<32x256xbf16>
    %cst_15 = arith.constant dense<0.000000e+00> : vector<32x256xf32>
    %27 = tpu.matmul %26, %25, %cst_15 {dimension_numbers = #tpu.dot_dimension_numbers<[1], [1], [0], [0], [0, 0, 1, 0], [], []>} : vector<32x256xbf16>, vector<256x256xbf16>, vector<32x256xf32> -> vector<32x256xf32>
    %c0_16 = arith.constant 0 : index
    %c0_17 = arith.constant 0 : index
    %c0_18 = arith.constant 0 : index
    %28 = vector.load %arg8[%c0_16, %c0_17, %c0_18] : memref<1x32x256xf32, #tpu.memory_space<vmem>>, vector<1x32x256xf32>
    %29 = vector.shape_cast %28 : vector<1x32x256xf32> to vector<32x256xf32>
    %30 = vector.shape_cast %27 : vector<32x256xf32> to vector<1x32x256xf32>
    tpu.vector_store %arg8[%c0_16, %c0_17, %c0_18], %30 {strides = array<i32>} : memref<1x32x256xf32, #tpu.memory_space<vmem>>, vector<1x32x256xf32>,
    return
  }
  func.func @transform_0(%arg0: i32, %arg1: i32) -> (i32, i32, i32) {
    %c0_i32 = arith.constant 0 : i32
    %c0_i32_0 = arith.constant 0 : i32
    %c0_i32_1 = arith.constant 0 : i32
    return %arg0, %c0_i32, %c0_i32_0 : i32, i32, i32
  }
  func.func @transform_1(%arg0: i32, %arg1: i32) -> (i32, i32, i32) {
    %c0_i32 = arith.constant 0 : i32
    %c0_i32_0 = arith.constant 0 : i32
    return %arg0, %arg1, %c0_i32 : i32, i32, i32
  }
  func.func @transform_2(%arg0: i32, %arg1: i32) -> (i32, i32) {
    %c0_i32 = arith.constant 0 : i32
    %c0_i32_0 = arith.constant 0 : i32
    %c0_i32_1 = arith.constant 0 : i32
    return %c0_i32, %c0_i32_0 : i32, i32
  }
  func.func @transform_3(%arg0: i32, %arg1: i32) -> (i32, i32) {
    %c0_i32 = arith.constant 0 : i32
    %c0_i32_0 = arith.constant 0 : i32
    %c0_i32_1 = arith.constant 0 : i32
    return %c0_i32, %c0_i32_0 : i32, i32
  }
  func.func @transform_4(%arg0: i32, %arg1: i32) -> (i32, i32) {
    %c0_i32 = arith.constant 0 : i32
    %c0_i32_0 = arith.constant 0 : i32
    return %arg1, %c0_i32 : i32, i32
  }
  func.func @transform_5(%arg0: i32, %arg1: i32) -> (i32, i32) {
    %c0_i32 = arith.constant 0 : i32
    %c0_i32_0 = arith.constant 0 : i32
    %c0_i32_1 = arith.constant 0 : i32
    return %c0_i32, %c0_i32_0 : i32, i32
  }
  func.func @transform_6(%arg0: i32, %arg1: i32) -> (i32, i32, i32) {
    %c0_i32 = arith.constant 0 : i32
    %c0_i32_0 = arith.constant 0 : i32
    return %arg0, %c0_i32, %arg1 : i32, i32, i32
  }
}

</mosaic_0001>

<bundles_post_ra>
// kernel: tpu_custom_call.1
= control target key start
LH: loop header
LB: loop body
LE: loop exit
PB: predicated region body
PF: predicated region fallthrough
CT: control target
= control target key end

     0   :  { %11 = vsyncpa [#allocation4], 0  ;;  %s3702_s0 = inlined_call_operand.vmem [shape: f32[2,33,256], index: 0, kind: input, shape index: {}]   ;;  %s3703_s1 = inlined_call_operand.vmem [shape: f32[2,256,33], index: 1, kind: input, shape index: {}]   ;;  %s3704_s2 = inlined_call_operand.vmem [shape: f32[96,33], index: 2, kind: input, shape index: {}]   ;;  %s3705_s3 = inlined_call_operand.vmem [shape: f32[33,32], index: 3, kind: input, shape index: {}]   ;;  %s3706_s4 = inlined_call_operand.vmem [shape: bf16[256,32], index: 4, kind: input, shape index: {}]   ;;  %s3707_s5 = inlined_call_operand.vmem [shape: f32[1,256], index: 5, kind: input, shape index: {}]   ;;  %s3708_s6 = inlined_call_operand.hbm [shape: f32[2,32,256], index: 6, kind: output, shape index: {}]  }
   0x1   :  { %13 = vsyncpa [#allocation4 + $0x1], 0  ;;  %s2675_s21 = smov 0   ;;  %s2677_s22 = smov 0  }
   0x2   :  { %s2679_s23 = smov 0   ;;  %s2681_s24 = smov 0  }
   0x3   :  { %s2683_s25 = smov 0   ;;  %s2685_s26 = smov 0  }
   0x4 LB: > { %s2072_s27 = sadd.s32 4294967295, %s2632_s26   ;;  %s2073_s28 = sadd.s32 4294967294, %s2632_s26   ;;  %s2632_s26 = sphi %s2685_s26, %s19_s26   ;;  %s2628_s25 = sphi %s2683_s25, %s3823_s25   ;;  %s2624_s24 = sphi %s2681_s24, %s3822_s24   ;;  %s2620_s23 = sphi %s2679_s23, %s3821_s23   ;;  %s2616_s22 = sphi %s2677_s22, %s3820_s22   ;;  %s2612_s21 = sphi %s2675_s21, %s3819_s21  }
   0x5   : > { %s31_s29 = sadd.s32 1, %s2628_s25  ;;  %s183_s30 = sadd.s32 1, %s2620_s23 }
   0x6   : > { %p33_p0 = scmp.ge.s32.totalorder %s31_s29, 2  ;;  %p193_p1 = scmp.ne.s32.totalorder %s2620_s23, %s2616_s22 }
   0x7   : > { %p194_p2 = scmp.eq.s32.totalorder %s2072_s27, 1  ;;  %p199_p3 = scmp.ne.s32.totalorder %s2616_s22, %s2612_s21 }
   0x8   : > { %s3825_s29 = smov (%p33_p0, %s31_s29), 0  ;;  %p200_p5 = scmp.eq.s32.totalorder %s2073_s28, 1 }
   0x9   : > { %p2715_p4 = por %p194_p2, %p193_p1  ;;  %s178_s8 = ssub.s32 %s2628_s25, %s3825_s29 }
   0xa   : > { %p2077_p6 = scmp.ge.s32.totalorder %s2632_s26, 1  ;;  %p181_p7 = scmp.eq.s32.totalorder %s178_s8, 0 }
   0xb   : > { %p2722_p8 = por %p200_p5, %p199_p3  ;;  %p257_p9 = scmp.lt.s32.totalorder %s2632_s26, 3 }
   0xc   : > { %s2728_s10 = scalar_select %p181_p7, %s2620_s23, %s183_s30  }
   0xd   : > { %p258_p10 = pnand %p2077_p6, %p257_p9 }
   0xf   : > { %261 = sbr.rel (%p258_p10) target bundleno = 1262 (0x4ee), region = 44 }
  0x16   : > { %p301_p11 = scmp.lt.s32.totalorder %s2624_s24, 1  ;;  %v2634_v0 = vmov 0.0   ;;  %vm387_vm0 = vcmask 1040384   ;;  %v587_v14 = vld [vmem:[%s3705_s3] sm:$0xff]  ;;  %v588_v15 = vld [vmem:[%s3705_s3 + $0x8] sm:$0xff]  ;;  %vm350_vm1 = vcmask 269312  }
  0x17   : > { %458 = vmatprep.mubr.f32.mxu0 %v2634_v0  ;;  %506 = vmatprep.mubr.f32.mxu1 %v2634_v0  ;;  %v328_v17 = vld [vmem:[%s3704_s2] sm:$0xff]  ;;  %v589_v19 = vld [vmem:[%s3705_s3 + $0x10] sm:$0xff]  ;;  %v2271_v20 = vpack.c.bf16 %v588_v15, %v587_v14  ;;  %v329_v22 = vld [vmem:[%s3704_s2 + $0x8] sm:$0xff]  ;;  %s2635_s8 = smov 32   ;;  %v2636_v14 = vmov 0   ;;  %vm1078_vm2 = vcmask 261120  }
  0x18   : > { %s2734_s11 = scalar_select %p301_p11, %s2624_s24, 1  ;;  %v336_v18 = vld [vmem:[%s3704_s2 + $0x40] sm:$0xff]  ;;  %v590_v23 = vld [vmem:[%s3705_s3 + $0x18] sm:$0xff]  ;;  %v2348_v24 = vld [vmem:[%s3706_s4 + $0x10] sm:$0xff]   ;;  %vm1147_vm3 = vcmask 523264  }
  0x19   : > { %v2346_v21 = vld [vmem:[%s3706_s4] sm:$0xff]   ;;  %v337_v25 = vld [vmem:[%s3704_s2 + $0x48] sm:$0xff]  ;;  %v2275_v26 = vpack.c.bf16 %v590_v23, %v589_v19  ;;  %1050 = vrot.lane.b32.xlu1 %v2348_v24, %s2635_s8  ;;  %v2349_v28 = vld [vmem:[%s3706_s4 + $0x18] sm:$0xff]   ;;  %s2637_s20 = smov [#allocation3]  }
  0x1a   : > { %s2285_s12 = smul.u32 80, %s2734_s11  ;;  %s2166_s30 = sshll.u32 %s2734_s11, 8  ;;  %1046 = vrot.lane.b32.xlu0 %v2346_v21, %s2635_s8  ;;  %v2347_v27 = vld [vmem:[%s3706_s4 + $0x8] sm:$0xff]   ;;  %v330_v29 = vld [vmem:[%s3704_s2 + $0x10] sm:$0xff]  ;;  %v2350_v31 = vld [vmem:[%s3706_s4 + $0x20] sm:$0xff]  }
  0x1b   : > { %s2792_s17 = scalar_lea.vmem %s3703_s1, %s2166_s30  ;;  %v338_v30 = vld [vmem:[%s3704_s2 + $0x50] sm:$0xff]  ;;  %v331_v32 = vld [vmem:[%s3704_s2 + $0x18] sm:$0xff]  ;;  %v591_v33 = vld [vmem:[%s3705_s3 + $0x20] sm:$0x1]  ;;  %s298_s30 = sand.u32 1, %s2616_s22  }
  0x1c   : > { %s305_s15 = scalar_lea.vmem %s3702_s0, %s2285_s12  ;;  %v2351_v34 = vld [vmem:[%s3706_s4 + $0x28] sm:$0xff]   ;;  %v339_v35 = vld [vmem:[%s3704_s2 + $0x58] sm:$0xff]  ;;  %v555_v36 = vld [vmem:[%s2792_s17] sm:$0xff]  ;;  %s2078_s13 = sshll.u32 %s298_s30, 6 }
  0x1d   : > { %v341_v1 = vld [vmem:[%s305_s15 + $0x8] sm:$0xff]  ;;  %v343_v2 = vld [vmem:[%s305_s15 + $0x18] sm:$0xff]  ;;  %v340_v3 = vld [vmem:[%s305_s15] sm:$0xff]  ;;  %1052 = vrot.lane.b32.xlu1 %v2349_v28, %s2635_s8  ;;  %s300_s14 = scalar_lea.vmem [#allocation3], %s2078_s13  ;;  %s2167_s11 = sshll.u32 %s2624_s24, 10 }
  0x1e   : > { %v2263_v4 = vpack.c.bf16 %v343_v2, %v341_v1  ;;  %v342_v5 = vld [vmem:[%s305_s15 + $0x10] sm:$0xff]  ;;  %v345_v6 = vld [vmem:[%s305_s15 + $0x28] sm:$0xff]  ;;  %v347_v7 = vld [vmem:[%s305_s15 + $0x38] sm:$0xff]  ;;  %1048 = vrot.lane.b32.xlu0 %v2347_v27, %s2635_s8  ;;  %s3654_s19 = scalar_lea.hbm %s3708_s6, %s2167_s11  ;;  %s2558_s27 = sshll.u32 %s2637_s20, 4  ;;  %s2559_s27 = int_to_ptr.vmem [resolvable:$false] %s2558_s27 }
  0x1f   : > { %v2265_v8 = vpack.c.bf16 %v342_v5, %v340_v3  ;;  %v2267_v9 = vpack.c.bf16 %v347_v7, %v345_v6  ;;  %v344_v10 = vld [vmem:[%s305_s15 + $0x20] sm:$0xff]  ;;  %v346_v11 = vld [vmem:[%s305_s15 + $0x30] sm:$0xff]  ;;  %v349_v13 = vld [vmem:[%s305_s15 + $0x48] sm:$0x1]  ;;  %s2560_s28 = scalar_lea.vmem %s2559_s27, 2048 }
  0x20   : > { %2264 = vmatprep.subr.bf16.mxu0 %v2263_v4  ;;  %2279 = vmatprep.subr.bf16.mxu1 %v2263_v4  ;;  %v2269_v12 = vpack.c.bf16 %v346_v11, %v344_v10  ;;  %v348_v16 = vld [vmem:[%s305_s15 + $0x40] sm:$0x1]  ;;  %v2352_v37 = vld [vmem:[%s3706_s4 + $0x30] sm:$0xff]   ;;  %v2353_v38 = vld [vmem:[%s3706_s4 + $0x38] sm:$0xff]   ;;  %s1966_s15 = sshll.u32 %s300_s14, 4  ;;  %s3649_s15 = int_to_ptr.vmem [resolvable:$true] %s1966_s15 }
  0x21   : > { %2266 = vmatpush1.bf16.msra.mxu0 %v2265_v8  ;;  %2282 = vmatpush1.bf16.msra.mxu1 %v2265_v8  ;;  %v332_v39 = vld [vmem:[%s3704_s2 + $0x20] sm:$0xff]  ;;  %v556_v40 = vld [vmem:[%s2792_s17 + $0x8] sm:$0xff]  ;;  %v557_v41 = vld [vmem:[%s2792_s17 + $0x10] sm:$0xff]  ;;  %s2554_s24 = scalar_lea.vmem %s3649_s15, 1024  ;;  %p2561_p1 = scmp.lt.s32.totalorder %s3649_s15, %s2559_s27 }
  0x22   : > { %2268 = vmatprep.subr.bf16.mxu0 %v2267_v9  ;;  %2280 = vmatprep.subr.bf16.mxu1 %v2267_v9  ;;  %v2354_v42 = vld [vmem:[%s3706_s4 + $0x40] sm:$0xff]   ;;  %v2355_v43 = vld [vmem:[%s3706_s4 + $0x48] sm:$0xff]   ;;  %v558_v45 = vld [vmem:[%s2792_s17 + $0x18] sm:$0xff]  ;;  %p2555_p12 = scmp.ne.s32.totalorder %s3649_s15, %s2554_s24  ;;  %p2562_p2 = scmp.lt.s32.totalorder %s2560_s28, %s2554_s24 }
  0x23   : > { %1054 = vrot.lane.b32.xlu0 %v2350_v31, %s2635_s8  ;;  %1056 = vrot.lane.b32.xlu1 %v2351_v34, %s2635_s8  ;;  %v333_v44 = vld [vmem:[%s3704_s2 + $0x28] sm:$0xff]  ;;  %v559_v46 = vld [vmem:[%s2792_s17 + $0x20] sm:$0xff] }
  0x24   : > { %v2356_v47 = vld [vmem:[%s3706_s4 + $0x50] sm:$0xff]   ;;  %v560_v49 = vld [vmem:[%s2792_s17 + $0x28] sm:$0xff]  ;;  %v335_v51 = vld [vmem:[%s3704_s2 + $0x38] sm:$0xff]  ;;  %p2556_p13 = pnand %p2555_p12, %p2715_p4  ;;  %p2563_p3 = por %p2562_p2, %p2561_p1 }
  0x25   : > { %2270 = vmatpush1.bf16.msra.mxu0 %v2269_v12  ;;  %2283 = vmatpush1.bf16.msra.mxu1 %v2269_v12  ;;  %v334_v48 = vld [vmem:[%s3704_s2 + $0x30] sm:$0xff]  ;;  %v562_v52 = vld [vmem:[%s2792_s17 + $0x38] sm:$0xff]  ;;  %v563_v53 = vld [vmem:[%s2792_s17 + $0x40] sm:$0xff] }
  0x26   : > { %2082 = vmatprep.subr.msk.mxu0 %vm387_vm0, %v349_v13  ;;  %2281 = vmatprep.subr.msk.mxu1 %vm387_vm0, %v349_v13  ;;  %v561_v50 = vld [vmem:[%s2792_s17 + $0x30] sm:$0xff]  ;;  %v564_v54 = vld [vmem:[%s2792_s17 + $0x48] sm:$0xff]  ;;  %v566_v56 = vld [vmem:[%s2792_s17 + $0x58] sm:$0xff]  ;;  %p2557_p0 = pneg %p2556_p13 }
  0x27   : > { %1058 = vrot.lane.b32.xlu0 %v2352_v37, %s2635_s8  ;;  %1060 = vrot.lane.b32.xlu1 %v2353_v38, %s2635_s8  ;;  %v565_v55 = vld [vmem:[%s2792_s17 + $0x50] sm:$0xff]  ;;  %v567_v57 = vld [vmem:[%s2792_s17 + $0x60] sm:$0xff] }
  0x28   : > { %v568_v58 = vld [vmem:[%s2792_s17 + $0x68] sm:$0xff]  ;;  %v569_v59 = vld [vmem:[%s2792_s17 + $0x70] sm:$0xff]  ;;  %v570_v60 = vld [vmem:[%s2792_s17 + $0x78] sm:$0xff]  ;;  %p2564_p5 = pnand %p2563_p3, %p2557_p0 }
  0x29   : > { %2083 = vmatpush1.msk.msra.mxu0 %vm387_vm0, %v348_v16  ;;  %2284 = vmatpush1.msk.msra.mxu1 %vm387_vm0, %v348_v16  ;;  %v571_v61 = vld [vmem:[%s2792_s17 + $0x80] sm:$0xff]  ;;  %v572_v62 = vld [vmem:[%s2792_s17 + $0x88] sm:$0xff]  ;;  %v573_v63 = vld [vmem:[%s2792_s17 + $0x90] sm:$0xff] }
  0x2a   : > { %2084 = vmatmul.mubr.msk.f32.vlgmr.msra.gmra.mrb[0].mxu0 %vm350_vm1, %v328_v17  ;;  %2092 = vmatmul.mubr.msk.f32.vlgmr.msra.gmra.mrb[0].mxu1 %vm350_vm1, %v336_v18  ;;  %v575_v1 = vld [vmem:[%s2792_s17 + $0xa0] sm:$0xff]  ;;  %v576_v2 = vld [vmem:[%s2792_s17 + $0xa8] sm:$0xff]  ;;  %v577_v3 = vld [vmem:[%s2792_s17 + $0xb0] sm:$0xff] }
  0x2b   : > { %464 = vmatprep.mubr.f32.mxu0 %v2634_v0  ;;  %512 = vmatprep.mubr.f32.mxu1 %v2634_v0  ;;  %v578_v4 = vld [vmem:[%s2792_s17 + $0xb8] sm:$0xff]  ;;  %v579_v5 = vld [vmem:[%s2792_s17 + $0xc0] sm:$0xff]  ;;  %v580_v6 = vld [vmem:[%s2792_s17 + $0xc8] sm:$0xff] }
  0x2c   : > { %2272 = vmatprep.subr.bf16.mxu1 %v2271_v20  ;;  %1062 = vrot.lane.b32.xlu0 %v2354_v42, %s2635_s8  ;;  %v581_v7 = vld [vmem:[%s2792_s17 + $0xd0] sm:$0xff]  ;;  %v582_v8 = vld [vmem:[%s2792_s17 + $0xd8] sm:$0xff]  ;;  %v583_v9 = vld [vmem:[%s2792_s17 + $0xe0] sm:$0xff] }
  0x2d   : > { %2274 = vmatpush3.bf16.msra.mxu1 %v2271_v20  ;;  %1064 = vrot.lane.b32.xlu1 %v2355_v43, %s2635_s8  ;;  %v584_v10 = vld [vmem:[%s2792_s17 + $0xe8] sm:$0xff]  ;;  %v585_v11 = vld [vmem:[%s2792_s17 + $0xf0] sm:$0xff]  ;;  %v586_v12 = vld [vmem:[%s2792_s17 + $0xf8] sm:$0xff] }
  0x2e   : > { %2085 = vmatmul.mubr.msk.f32.gmra.mrb[2].mxu0 %vm350_vm1, %v329_v22  ;;  %2093 = vmatmul.mubr.msk.f32.gmra.mrb[2].mxu1 %vm350_vm1, %v337_v25  ;;  %v2357_v13 = vld [vmem:[%s3706_s4 + $0x58] sm:$0xff]   ;;  %v2358_v15 = vld [vmem:[%s3706_s4 + $0x60] sm:$0xff]   ;;  %v2359_v16 = vld [vmem:[%s3706_s4 + $0x68] sm:$0xff]  }
  0x2f   : > { %470 = vmatprep.mubr.f32.mxu0 %v2634_v0  ;;  %518 = vmatprep.mubr.f32.mxu1 %v2634_v0  ;;  %v2360_v17 = vld [vmem:[%s3706_s4 + $0x70] sm:$0xff]   ;;  %v2361_v18 = vld [vmem:[%s3706_s4 + $0x78] sm:$0xff]  }
  0x30   : > { %2276 = vmatprep.subr.bf16.mxu1 %v2275_v26  ;;  %1066 = vrot.lane.b32.xlu0 %v2356_v47, %s2635_s8 }
  0x31   : > { %2278 = vmatpush3.bf16.msra.mxu1 %v2275_v26  ;;  %1068 = vrot.lane.b32.xlu1 %v2357_v13, %s2635_s8 }
  0x32   : > { %2086 = vmatmul.mubr.msk.f32.gmra.mrb[4].mxu0 %vm350_vm1, %v330_v29  ;;  %2094 = vmatmul.mubr.msk.f32.gmra.mrb[4].mxu1 %vm350_vm1, %v338_v30 }
  0x33   : > { %476 = vmatprep.mubr.f32.mxu0 %v2634_v0  ;;  %524 = vmatprep.mubr.f32.mxu1 %v2634_v0 }
  0x34   : > { %2213 = vmatprep.subr.msk.mxu1 %vm387_vm0, %v591_v33  ;;  %1070 = vrot.lane.b32.xlu0 %v2358_v15, %s2635_s8 }
  0x35   : > { %2214 = vmatpush3.msk.msra.mxu1 %vm387_vm0, %v591_v33  ;;  %1072 = vrot.lane.b32.xlu1 %v2359_v16, %s2635_s8 }
  0x36   : > { %2087 = vmatmul.mubr.msk.f32.gmra.mrb[6].mxu0 %vm350_vm1, %v331_v32  ;;  %2095 = vmatmul.mubr.msk.f32.gmra.mrb[6].mxu1 %vm350_vm1, %v339_v35 }
  0x37   : > { %482 = vmatprep.mubr.f32.mxu0 %v2634_v0  ;;  %2215 = vmatprep.mubr.msk.f32.mxu1 %vm350_vm1, %v555_v36 }
  0x38   : > { %1074 = vrot.lane.b32.xlu0 %v2360_v17, %s2635_s8 }
  0x39   : > { %1076 = vrot.lane.b32.xlu1 %v2361_v18, %s2635_s8 }
  0x3a   : > { %2088 = vmatmul.mubr.msk.f32.gmra.mrb[8].mxu0 %vm350_vm1, %v332_v39  ;;  %2216 = vmatmul.mubr.msk.f32.vlgmr.msra.gmra.mrb[8].mxu1 %vm350_vm1, %v556_v40 }
  0x3b   : > { %488 = vmatprep.mubr.f32.mxu0 %v2634_v0  ;;  %2218 = vmatprep.mubr.msk.f32.mxu1 %vm350_vm1, %v557_v41 }
  0x3e   : > { %2089 = vmatmul.mubr.msk.f32.gmra.mrb[10].mxu0 %vm350_vm1, %v333_v44  ;;  %2219 = vmatmul.mubr.msk.f32.gmra.mrb[10].mxu1 %vm350_vm1, %v558_v45 }
  0x3f   : > { %494 = vmatprep.mubr.f32.mxu0 %v2634_v0  ;;  %2221 = vmatprep.mubr.msk.f32.mxu1 %vm350_vm1, %v559_v46 }
  0x42   : > { %2090 = vmatmul.mubr.msk.f32.gmra.mrb[12].mxu0 %vm350_vm1, %v334_v48  ;;  %2222 = vmatmul.mubr.msk.f32.gmra.mrb[12].mxu1 %vm350_vm1, %v560_v49 }
  0x43   : > { %500 = vmatprep.mubr.f32.mxu0 %v2634_v0  ;;  %2224 = vmatprep.mubr.msk.f32.mxu1 %vm350_vm1, %v561_v50  ;;  %v574_v0 = vld [vmem:[%s2792_s17 + $0x98] sm:$0xff]  ;;  %s3656_s17 = scalar_lea.sflag [#allocation4], %s298_s30 }
  0x46   : > { %2091 = vmatmul.mubr.msk.f32.gmra.mrb[14].mxu0 %vm350_vm1, %v335_v51  ;;  %2225 = vmatmul.mubr.msk.f32.gmra.mrb[14].mxu1 %vm350_vm1, %v562_v52 }
  0x47   : > { %2227 = vmatprep.mubr.msk.f32.mxu1 %vm350_vm1, %v563_v53  ;;  %1212 = vmatprep.mubr.bf16.mxu0 %v2636_v14 }
  0x4a   : > { %2228 = vmatmul.mubr.msk.f32.gmra.mrb[16].mxu1 %vm350_vm1, %v564_v54 }
  0x4b   : > { %2230 = vmatprep.mubr.msk.f32.mxu1 %vm350_vm1, %v565_v55 }
  0x4e   : > { %2231 = vmatmul.mubr.msk.f32.gmra.mrb[18].mxu1 %vm350_vm1, %v566_v56 }
  0x4f   : > { %2233 = vmatprep.mubr.msk.f32.mxu1 %vm350_vm1, %v567_v57 }
  0x52   : > { %2234 = vmatmul.mubr.msk.f32.gmra.mrb[20].mxu1 %vm350_vm1, %v568_v58 }
  0x53   : > { %2236 = vmatprep.mubr.msk.f32.mxu1 %vm350_vm1, %v569_v59 }
  0x56   : > { %2237 = vmatmul.mubr.msk.f32.gmra.mrb[22].mxu1 %vm350_vm1, %v570_v60 }
  0x57   : > { %2239 = vmatprep.mubr.msk.f32.mxu1 %vm350_vm1, %v571_v61 }
  0x5a   : > { %2240 = vmatmul.mubr.msk.f32.gmra.mrb[24].mxu1 %vm350_vm1, %v572_v62 }
  0x5b   : > { %2242 = vmatprep.mubr.msk.f32.mxu1 %vm350_vm1, %v573_v63 }
  0x5e   : > { %2243 = vmatmul.mubr.msk.f32.gmra.mrb[26].mxu1 %vm350_vm1, %v574_v0 }
  0x5f   : > { %2245 = vmatprep.mubr.msk.f32.mxu1 %vm350_vm1, %v575_v1 }
  0x62   : > { %2246 = vmatmul.mubr.msk.f32.gmra.mrb[28].mxu1 %vm350_vm1, %v576_v2 }
  0x63   : > { %2248 = vmatprep.mubr.msk.f32.mxu1 %vm350_vm1, %v577_v3 }
  0x66   : > { %2249 = vmatmul.mubr.msk.f32.gmra.mrb[30].mxu1 %vm350_vm1, %v578_v4 }
  0x67   : > { %2251 = vmatprep.mubr.msk.f32.mxu1 %vm350_vm1, %v579_v5 }
  0x6a   : > { %2252 = vmatmul.mubr.msk.f32.gmra.mrb[32].mxu1 %vm350_vm1, %v580_v6 }
  0x6b   : > { %2254 = vmatprep.mubr.msk.f32.mxu1 %vm350_vm1, %v581_v7 }
  0x6e   : > { %2255 = vmatmul.mubr.msk.f32.gmra.mrb[34].mxu1 %vm350_vm1, %v582_v8 }
  0x6f   : > { %2257 = vmatprep.mubr.msk.f32.mxu1 %vm350_vm1, %v583_v9 }
  0x72   : > { %2258 = vmatmul.mubr.msk.f32.gmra.mrb[36].mxu1 %vm350_vm1, %v584_v10 }
  0x73   : > { %2260 = vmatprep.mubr.msk.f32.mxu1 %vm350_vm1, %v585_v11 }
  0x76   : > { %2261 = vmatmul.mubr.msk.f32.gmra.mrb[38].mxu1 %vm350_vm1, %v586_v12 }
  0x8c   : > { %v1047_v2 = vpop.permute.xlu0 %1046 }
  0x90   : > { %v1049_v10 = vpop.permute.xlu0 %1048 }
  0xfd   : > { %v460_v19 = vpop.f32.mrb[0].mxu0  ;;  %v2954_v20 = vpop.f32.mrb[0].mxu1 }
  0xfe   : > { %3746 = vst [vmem:[#allocation6_spill] sm:$0xff] %v2954_v20  ;;  %v462_v21 = vpop.f32.mrb[1].mxu0  ;;  %v510_v22 = vpop.f32.mrb[1].mxu1 }
 0x101   : > { %v466_v23 = vpop.f32.mrb[2].mxu0  ;;  %v2956_v24 = vpop.f32.mrb[2].mxu1 }
 0x102   : > { %3747 = vst [vmem:[#allocation7_spill] sm:$0xff] %v2956_v24  ;;  %v531_v25 = vpack.c.bf16 %v466_v23, %v460_v19  ;;  %v468_v26 = vpop.f32.mrb[3].mxu0  ;;  %v516_v28 = vpop.f32.mrb[3].mxu1 }
 0x103   : > { %v532_v29 = vpack.c.bf16 %v468_v26, %v462_v21  ;;  %v540_v30 = vpack.c.bf16 %v516_v28, %v510_v22  ;;  %v1051_v19 = vpop.permute.xlu1 %1050 }
 0x105   : > { %v472_v31 = vpop.f32.mrb[4].mxu0  ;;  %1180 = vmatprep.subr.bf16.mxu0 %v532_v29  ;;  %1921 = vmatprep.mubr.bf16.mxu1 %v540_v30  ;;  %v2960_v32 = vpop.f32.mrb[4].mxu1 }
 0x106   : > { %3748 = vst [vmem:[#allocation8_spill] sm:$0xff] %v2960_v32  ;;  %v474_v33 = vpop.f32.mrb[5].mxu0  ;;  %1181 = vmatpush1.bf16.msra.mxu0 %v531_v25  ;;  %v2962_v34 = vpop.f32.mrb[5].mxu1 }
 0x107   : > { %3749 = vst [vmem:[#allocation9_spill] sm:$0xff] %v2962_v34  ;;  %v1053_v30 = vpop.permute.xlu1 %1052 }
 0x109   : > { %v478_v35 = vpop.f32.mrb[6].mxu0  ;;  %v2964_v36 = vpop.f32.mrb[6].mxu1 }
 0x10a   : > { %3750 = vst [vmem:[#allocation10_spill] sm:$0xff] %v2964_v36  ;;  %v533_v37 = vpack.c.bf16 %v478_v35, %v472_v31  ;;  %v480_v38 = vpop.f32.mrb[7].mxu0  ;;  %v2968_v40 = vpop.f32.mrb[7].mxu1 }
 0x10b   : > { %3751 = vst [vmem:[#allocation11_spill] sm:$0xff] %v2968_v40  ;;  %v534_v41 = vpack.c.bf16 %v480_v38, %v474_v33 }
 0x10d   : > { %v484_v43 = vpop.f32.mrb[8].mxu0  ;;  %1182 = vmatprep.subr.bf16.mxu0 %v534_v41  ;;  %v2217_v44 = vpop.f32.mrb[8].mxu1 }
 0x10e   : > { %v486_v45 = vpop.f32.mrb[9].mxu0  ;;  %1183 = vmatpush1.bf16.msra.mxu0 %v533_v37  ;;  %v759_v46 = vpop.f32.mrb[9].mxu1 }
 0x10f   : > { %v918_v47 = vpack.c.bf16 %v2217_v44, %v759_v46  ;;  %v1055_v44 = vpop.permute.xlu0 %1054 }
 0x111   : > { %v490_v48 = vpop.f32.mrb[10].mxu0  ;;  %v2220_v49 = vpop.f32.mrb[10].mxu1  ;;  %v1081_v5 = vsel %vm1078_vm2, %v918_v47, %v1047_v2 }
 0x112   : > { %v535_v50 = vpack.c.bf16 %v490_v48, %v484_v43  ;;  %v492_v51 = vpop.f32.mrb[11].mxu0  ;;  %v769_v52 = vpop.f32.mrb[11].mxu1 }
 0x113   : > { %v536_v53 = vpack.c.bf16 %v492_v51, %v486_v45  ;;  %v919_v54 = vpack.c.bf16 %v2220_v49, %v769_v52  ;;  %v1057_v52 = vpop.permute.xlu1 %1056 }
 0x115   : > { %v496_v55 = vpop.f32.mrb[12].mxu0  ;;  %1184 = vmatprep.subr.bf16.mxu0 %v536_v53  ;;  %v2223_v56 = vpop.f32.mrb[12].mxu1  ;;  %v1084_v13 = vsel %vm1078_vm2, %v919_v54, %v1049_v10 }
 0x116   : > { %v498_v57 = vpop.f32.mrb[13].mxu0  ;;  %1185 = vmatpush1.bf16.msra.mxu0 %v535_v50  ;;  %v779_v58 = vpop.f32.mrb[13].mxu1 }
 0x117   : > { %v920_v59 = vpack.c.bf16 %v2223_v56, %v779_v58  ;;  %v1059_v58 = vpop.permute.xlu0 %1058 }
 0x119   : > { %v502_v60 = vpop.f32.mrb[14].mxu0  ;;  %v2226_v61 = vpop.f32.mrb[14].mxu1  ;;  %v1087_v23 = vsel %vm1078_vm2, %v920_v59, %v1051_v19 }
 0x11a   : > { %v537_v62 = vpack.c.bf16 %v502_v60, %v496_v55  ;;  %v504_v63 = vpop.f32.mrb[15].mxu0  ;;  %v789_v0 = vpop.f32.mrb[15].mxu1 }
 0x11b   : > { %v538_v1 = vpack.c.bf16 %v504_v63, %v498_v57  ;;  %v921_v3 = vpack.c.bf16 %v2226_v61, %v789_v0  ;;  %v1061_v60 = vpop.permute.xlu1 %1060 }
 0x11d   : > { %1186 = vmatprep.subr.bf16.mxu0 %v538_v1  ;;  %v2229_v4 = vpop.f32.mrb[16].mxu1  ;;  %v1090_v35 = vsel %vm1078_vm2, %v921_v3, %v1053_v30  ;;  %v1063_v1 = vpop.permute.xlu0 %1062 }
 0x11e   : > { %1187 = vmatpush1.bf16.msra.mxu0 %v537_v62  ;;  %v799_v6 = vpop.f32.mrb[17].mxu1 }
 0x11f   : > { %v922_v7 = vpack.c.bf16 %v2229_v4, %v799_v6  ;;  %v1065_v3 = vpop.permute.xlu1 %1064 }
 0x121   : > { %2145 = vmatmul.mubr.msk.bf16.vlgmr.msra.gmra.mrb[16].mxu0 %vm1147_vm3, %v1081_v5  ;;  %v2232_v8 = vpop.f32.mrb[18].mxu1  ;;  %v1093_v47 = vsel %vm1078_vm2, %v922_v7, %v1055_v44  ;;  %v1067_v5 = vpop.permute.xlu0 %1066 }
 0x122   : > { %1222 = vmatprep.mubr.bf16.mxu0 %v2636_v14  ;;  %v809_v9 = vpop.f32.mrb[19].mxu1 }
 0x123   : > { %v923_v11 = vpack.c.bf16 %v2232_v8, %v809_v9  ;;  %v1069_v7 = vpop.permute.xlu1 %1068 }
 0x125   : > { %v2235_v12 = vpop.f32.mrb[20].mxu1  ;;  %v1096_v55 = vsel %vm1078_vm2, %v923_v11, %v1057_v52  ;;  %v1071_v9 = vpop.permute.xlu0 %1070 }
 0x126   : > { %v819_v15 = vpop.f32.mrb[21].mxu1 }
 0x127   : > { %v924_v16 = vpack.c.bf16 %v2235_v12, %v819_v15  ;;  %v1073_v11 = vpop.permute.xlu1 %1072 }
 0x129   : > { %2146 = vmatmul.mubr.msk.bf16.gmra.mrb[20].mxu0 %vm1147_vm3, %v1084_v13  ;;  %v2238_v17 = vpop.f32.mrb[22].mxu1  ;;  %v1099_v59 = vsel %vm1078_vm2, %v924_v16, %v1059_v58  ;;  %v1075_v13 = vpop.permute.xlu0 %1074 }
 0x12a   : > { %1232 = vmatprep.mubr.bf16.mxu0 %v2636_v14  ;;  %v829_v18 = vpop.f32.mrb[23].mxu1 }
 0x12b   : > { %v925_v21 = vpack.c.bf16 %v2238_v17, %v829_v18  ;;  %v1077_v16 = vpop.permute.xlu1 %1076  ;;  %v1137_v18 = vlaneseq }
 0x12d   : > { %v2241_v22 = vpop.f32.mrb[24].mxu1  ;;  %v1102_v62 = vsel %vm1078_vm2, %v925_v21, %v1061_v60  ;;  %v1138_v19 = vshrl.u32 %v1137_v18, 7 }
 0x12e   : > { %v839_v25 = vpop.f32.mrb[25].mxu1 }
 0x12f   : > { %v926_v26 = vpack.c.bf16 %v2241_v22, %v839_v25  ;;  %v1139_v21 = vsub.s32 0, %v1138_v19  ;;  %v1135_v22 = vld [vmem:[%s3707_s5] sm:$0x3] }
 0x131   : > { %2147 = vmatmul.mubr.msk.bf16.gmra.mrb[24].mxu0 %vm1147_vm3, %v1087_v23  ;;  %v2244_v28 = vpop.f32.mrb[26].mxu1  ;;  %v1105_v2 = vsel %vm1078_vm2, %v926_v26, %v1063_v1  ;;  %v1143_v23 = vsub.s32 1, %v1138_v19  ;;  %v3022_v25 = vrot.slane %v1135_v22, %v1139_v21 }
 0x132   : > { %1242 = vmatprep.mubr.bf16.mxu0 %v2636_v14  ;;  %v849_v29 = vpop.f32.mrb[27].mxu1 }
 0x133   : > { %v927_v31 = vpack.c.bf16 %v2244_v28, %v849_v29  ;;  %v3024_v26 = vrot.slane %v1135_v22, %v1143_v23 }
 0x135   : > { %v2247_v33 = vpop.f32.mrb[28].mxu1  ;;  %v1108_v4 = vsel %vm1078_vm2, %v927_v31, %v1065_v3 }
 0x136   : > { %v859_v37 = vpop.f32.mrb[29].mxu1 }
 0x137   : > { %v928_v38 = vpack.c.bf16 %v2247_v33, %v859_v37 }
 0x139   : > { %2148 = vmatmul.mubr.msk.bf16.gmra.mrb[28].mxu0 %vm1147_vm3, %v1090_v35  ;;  %v2250_v41 = vpop.f32.mrb[30].mxu1  ;;  %v1111_v6 = vsel %vm1078_vm2, %v928_v38, %v1067_v5 }
 0x13a   : > { %1252 = vmatprep.mubr.bf16.mxu0 %v2636_v14  ;;  %v869_v43 = vpop.f32.mrb[31].mxu1 }
 0x13b   : > { %v929_v45 = vpack.c.bf16 %v2250_v41, %v869_v43 }
 0x13d   : > { %v2253_v46 = vpop.f32.mrb[32].mxu1  ;;  %v1114_v8 = vsel %vm1078_vm2, %v929_v45, %v1069_v7 }
 0x13e   : > { %v879_v48 = vpop.f32.mrb[33].mxu1 }
 0x13f   : > { %v930_v49 = vpack.c.bf16 %v2253_v46, %v879_v48 }
 0x141   : > { %2149 = vmatmul.mubr.msk.bf16.gmra.mrb[32].mxu0 %vm1147_vm3, %v1093_v47  ;;  %v2256_v50 = vpop.f32.mrb[34].mxu1  ;;  %v1117_v10 = vsel %vm1078_vm2, %v930_v49, %v1071_v9 }
 0x142   : > { %1262 = vmatprep.mubr.bf16.mxu0 %v2636_v14  ;;  %v889_v51 = vpop.f32.mrb[35].mxu1 }
 0x143   : > { %v931_v53 = vpack.c.bf16 %v2256_v50, %v889_v51 }
 0x145   : > { %v2259_v54 = vpop.f32.mrb[36].mxu1  ;;  %v1120_v12 = vsel %vm1078_vm2, %v931_v53, %v1073_v11 }
 0x146   : > { %v899_v56 = vpop.f32.mrb[37].mxu1 }
 0x147   : > { %v932_v57 = vpack.c.bf16 %v2259_v54, %v899_v56 }
 0x149   : > { %2150 = vmatmul.mubr.msk.bf16.gmra.mrb[36].mxu0 %vm1147_vm3, %v1096_v55  ;;  %v2262_v61 = vpop.f32.mrb[38].mxu1  ;;  %v1123_v15 = vsel %vm1078_vm2, %v932_v57, %v1075_v13 }
 0x14a   : > { %1272 = vmatprep.mubr.bf16.mxu0 %v2636_v14  ;;  %v909_v63 = vpop.f32.mrb[39].mxu1 }
 0x14b   : > { %v933_v0 = vpack.c.bf16 %v2262_v61, %v909_v63 }
 0x14d   : > { %v1126_v17 = vsel %vm1078_vm2, %v933_v0, %v1077_v16 }
 0x151   : > { %2151 = vmatmul.mubr.msk.bf16.gmra.mrb[40].mxu0 %vm1147_vm3, %v1099_v59 }
 0x152   : > { %1282 = vmatprep.mubr.bf16.mxu0 %v2636_v14 }
 0x159   : > { %2152 = vmatmul.mubr.msk.bf16.gmra.mrb[44].mxu0 %vm1147_vm3, %v1102_v62 }
 0x15a   : > { %1292 = vmatprep.mubr.bf16.mxu0 %v2636_v14 }
 0x161   : > { %2153 = vmatmul.mubr.msk.bf16.gmra.mrb[48].mxu0 %vm1147_vm3, %v1105_v2 }
 0x162   : > { %1302 = vmatprep.mubr.bf16.mxu0 %v2636_v14 }
 0x169   : > { %2154 = vmatmul.mubr.msk.bf16.gmra.mrb[52].mxu0 %vm1147_vm3, %v1108_v4 }
 0x16a   : > { %1312 = vmatprep.mubr.bf16.mxu0 %v2636_v14 }
 0x171   : > { %2155 = vmatmul.mubr.msk.bf16.gmra.mrb[56].mxu0 %vm1147_vm3, %v1111_v6 }
 0x172   : > { %1322 = vmatprep.mubr.bf16.mxu0 %v2636_v14 }
 0x179   : > { %2156 = vmatmul.mubr.msk.bf16.gmra.mrb[60].mxu0 %vm1147_vm3, %v1114_v8 }
 0x17a   : > { %1332 = vmatprep.mubr.bf16.mxu0 %v2636_v14 }
 0x181   : > { %2157 = vmatmul.mubr.msk.bf16.gmra.mrb[64].mxu0 %vm1147_vm3, %v1117_v10 }
 0x182   : > { %1342 = vmatprep.mubr.bf16.mxu0 %v2636_v14 }
 0x189   : > { %2158 = vmatmul.mubr.msk.bf16.gmra.mrb[68].mxu0 %vm1147_vm3, %v1120_v12 }
 0x18a   : > { %1352 = vmatprep.mubr.bf16.mxu0 %v2636_v14 }
 0x191   : > { %2159 = vmatmul.mubr.msk.bf16.gmra.mrb[72].mxu0 %vm1147_vm3, %v1123_v15 }
 0x192   : > { %1362 = vmatprep.mubr.bf16.mxu0 %v2636_v14 }
 0x199   : > { %2160 = vmatmul.mubr.msk.bf16.gmra.mrb[76].mxu0 %vm1147_vm3, %v1126_v17 }
 0x1f4   : > { %v1214_v28 = vpop.f32.mrb[16].mxu0 }
 0x1f5   : > { %v3027_v14 = vadd.f32 %v1214_v28, %v3022_v25  ;;  %v1216_v29 = vpop.f32.mrb[17].mxu0 }
 0x1f6   : > { %v3030_v30 = vadd.f32 %v1216_v29, %v3024_v26  ;;  %v1218_v31 = vpop.f32.mrb[18].mxu0 }
 0x1f7   : > { %v3033_v33 = vadd.f32 %v1218_v31, %v3022_v25  ;;  %v1220_v35 = vpop.f32.mrb[19].mxu0 }
 0x1f8   : > { %v3036_v37 = vadd.f32 %v1220_v35, %v3024_v26  ;;  %v1373_v38 = vmax.f32 %v3027_v14, %v3030_v30 }
 0x1fa   : > { %1374 = vmax.xlane.f32.xlu0 %v1373_v38  ;;  %v1376_v41 = vmax.f32 %v3033_v33, %v3036_v37 }
 0x1fc   : > { %v1224_v43 = vpop.f32.mrb[20].mxu0  ;;  %1377 = vmax.xlane.f32.xlu1 %v1376_v41 }
 0x1fd   : > { %v3043_v44 = vadd.f32 %v1224_v43, %v3022_v25  ;;  %v1226_v45 = vpop.f32.mrb[21].mxu0 }
 0x1fe   : > { %v3046_v46 = vadd.f32 %v1226_v45, %v3024_v26  ;;  %v1228_v47 = vpop.f32.mrb[22].mxu0 }
 0x1ff   : > { %v1230_v48 = vpop.f32.mrb[23].mxu0  ;;  %v3049_v49 = vadd.f32 %v1228_v47, %v3022_v25 }
 0x200   : > { %v3052_v50 = vadd.f32 %v1230_v48, %v3024_v26  ;;  %v1379_v51 = vmax.f32 %v3043_v44, %v3046_v46 }
 0x202   : > { %1380 = vmax.xlane.f32.xlu0 %v1379_v51  ;;  %v1382_v53 = vmax.f32 %v3049_v49, %v3052_v50 }
 0x204   : > { %v1234_v52 = vpop.f32.mrb[24].mxu0 }
 0x205   : > { %v3059_v54 = vadd.f32 %v1234_v52, %v3022_v25  ;;  %v1236_v55 = vpop.f32.mrb[25].mxu0 }
 0x206   : > { %v3062_v56 = vadd.f32 %v1236_v55, %v3024_v26  ;;  %v1238_v57 = vpop.f32.mrb[26].mxu0  ;;  %1383 = vmax.xlane.f32.xlu0 %v1382_v53 }
 0x207   : > { %v3065_v58 = vadd.f32 %v1238_v57, %v3022_v25  ;;  %v1240_v59 = vpop.f32.mrb[27].mxu0 }
 0x208   : > { %v3068_v60 = vadd.f32 %v1240_v59, %v3024_v26  ;;  %v1385_v61 = vmax.f32 %v3059_v54, %v3062_v56 }
 0x20a   : > { %1386 = vmax.xlane.f32.xlu1 %v1385_v61  ;;  %v1388_v62 = vmax.f32 %v3065_v58, %v3068_v60 }
 0x20c   : > { %v1244_v63 = vpop.f32.mrb[28].mxu0  ;;  %1389 = vmax.xlane.f32.xlu0 %v1388_v62 }
 0x20d   : > { %v3075_v0 = vadd.f32 %v1244_v63, %v3022_v25  ;;  %v1246_v1 = vpop.f32.mrb[29].mxu0 }
 0x20e   : > { %v3078_v2 = vadd.f32 %v1246_v1, %v3024_v26  ;;  %v1248_v3 = vpop.f32.mrb[30].mxu0 }
 0x20f   : > { %v3081_v4 = vadd.f32 %v1248_v3, %v3022_v25  ;;  %v1250_v5 = vpop.f32.mrb[31].mxu0 }
 0x210   : > { %v3084_v6 = vadd.f32 %v1250_v5, %v3024_v26  ;;  %v1391_v7 = vmax.f32 %v3075_v0, %v3078_v2 }
 0x212   : > { %1392 = vmax.xlane.f32.xlu1 %v1391_v7  ;;  %v1394_v8 = vmax.f32 %v3081_v4, %v3084_v6 }
 0x214   : > { %v1254_v9 = vpop.f32.mrb[32].mxu0  ;;  %1395 = vmax.xlane.f32.xlu0 %v1394_v8 }
 0x215   : > { %v3091_v10 = vadd.f32 %v1254_v9, %v3022_v25  ;;  %v1256_v11 = vpop.f32.mrb[33].mxu0 }
 0x216   : > { %v3094_v12 = vadd.f32 %v1256_v11, %v3024_v26  ;;  %v1258_v13 = vpop.f32.mrb[34].mxu0 }
 0x217   : > { %v3097_v15 = vadd.f32 %v1258_v13, %v3022_v25  ;;  %v1260_v16 = vpop.f32.mrb[35].mxu0 }
 0x218   : > { %v3100_v17 = vadd.f32 %v1260_v16, %v3024_v26  ;;  %v1397_v18 = vmax.f32 %v3091_v10, %v3094_v12 }
 0x21a   : > { %1398 = vmax.xlane.f32.xlu1 %v1397_v18  ;;  %v1400_v19 = vmax.f32 %v3097_v15, %v3100_v17 }
 0x21c   : > { %v1264_v21 = vpop.f32.mrb[36].mxu0  ;;  %1401 = vmax.xlane.f32.xlu0 %v1400_v19 }
 0x21d   : > { %v3107_v22 = vadd.f32 %v1264_v21, %v3022_v25  ;;  %v1266_v23 = vpop.f32.mrb[37].mxu0 }
 0x21e   : > { %v3110_v28 = vadd.f32 %v1266_v23, %v3024_v26  ;;  %v1268_v29 = vpop.f32.mrb[38].mxu0 }
 0x21f   : > { %v3113_v31 = vadd.f32 %v1268_v29, %v3022_v25  ;;  %v1270_v35 = vpop.f32.mrb[39].mxu0 }
 0x220   : > { %v3116_v38 = vadd.f32 %v1270_v35, %v3024_v26  ;;  %v1403_v41 = vmax.f32 %v3107_v22, %v3110_v28 }
 0x222   : > { %1404 = vmax.xlane.f32.xlu1 %v1403_v41  ;;  %v1406_v43 = vmax.f32 %v3113_v31, %v3116_v38 }
 0x224   : > { %v1274_v45 = vpop.f32.mrb[40].mxu0  ;;  %1407 = vmax.xlane.f32.xlu0 %v1406_v43 }
 0x225   : > { %v3123_v47 = vadd.f32 %v1274_v45, %v3022_v25  ;;  %v1276_v48 = vpop.f32.mrb[41].mxu0 }
 0x226   : > { %v3126_v51 = vadd.f32 %v1276_v48, %v3024_v26  ;;  %v1278_v52 = vpop.f32.mrb[42].mxu0 }
 0x227   : > { %v3129_v53 = vadd.f32 %v1278_v52, %v3022_v25  ;;  %v1280_v55 = vpop.f32.mrb[43].mxu0 }
 0x228   : > { %v3132_v57 = vadd.f32 %v1280_v55, %v3024_v26  ;;  %v1409_v59 = vmax.f32 %v3123_v47, %v3126_v51 }
 0x22a   : > { %1410 = vmax.xlane.f32.xlu1 %v1409_v59  ;;  %v1412_v61 = vmax.f32 %v3129_v53, %v3132_v57 }
 0x22c   : > { %v1284_v62 = vpop.f32.mrb[44].mxu0  ;;  %1413 = vmax.xlane.f32.xlu0 %v1412_v61 }
 0x22d   : > { %v3139_v63 = vadd.f32 %v1284_v62, %v3022_v25  ;;  %v1286_v1 = vpop.f32.mrb[45].mxu0 }
 0x22e   : > { %v3142_v3 = vadd.f32 %v1286_v1, %v3024_v26  ;;  %v1288_v5 = vpop.f32.mrb[46].mxu0 }
 0x22f   : > { %v3145_v7 = vadd.f32 %v1288_v5, %v3022_v25  ;;  %v1290_v8 = vpop.f32.mrb[47].mxu0 }
 0x230   : > { %v3148_v9 = vadd.f32 %v1290_v8, %v3024_v26  ;;  %v1415_v11 = vmax.f32 %v3139_v63, %v3142_v3 }
 0x232   : > { %1416 = vmax.xlane.f32.xlu1 %v1415_v11  ;;  %v1418_v13 = vmax.f32 %v3145_v7, %v3148_v9 }
 0x234   : > { %v1294_v16 = vpop.f32.mrb[48].mxu0  ;;  %1419 = vmax.xlane.f32.xlu0 %v1418_v13 }
 0x235   : > { %v3155_v18 = vadd.f32 %v1294_v16, %v3022_v25  ;;  %v1296_v19 = vpop.f32.mrb[49].mxu0 }
 0x236   : > { %v3158_v21 = vadd.f32 %v1296_v19, %v3024_v26  ;;  %v1298_v23 = vpop.f32.mrb[50].mxu0 }
 0x237   : > { %v3161_v29 = vadd.f32 %v1298_v23, %v3022_v25  ;;  %v1300_v35 = vpop.f32.mrb[51].mxu0 }
 0x238   : > { %3752 = vst [vmem:[#allocation12_spill] sm:$0xff] %v3158_v21  ;;  %v3164_v41 = vadd.f32 %v1300_v35, %v3024_v26  ;;  %v1421_v43 = vmax.f32 %v3155_v18, %v3158_v21 }
 0x239   : > { %3753 = vst [vmem:[#allocation13_spill] sm:$0xff] %v3161_v29 }
 0x23a   : > { %3754 = vst [vmem:[#allocation14_spill] sm:$0xff] %v3164_v41  ;;  %1422 = vmax.xlane.f32.xlu1 %v1421_v43  ;;  %v1424_v45 = vmax.f32 %v3161_v29, %v3164_v41 }
 0x23c   : > { %v1304_v48 = vpop.f32.mrb[52].mxu0  ;;  %1425 = vmax.xlane.f32.xlu0 %v1424_v45 }
 0x23d   : > { %v3171_v52 = vadd.f32 %v1304_v48, %v3022_v25  ;;  %v1306_v55 = vpop.f32.mrb[53].mxu0 }
 0x23e   : > { %v3174_v59 = vadd.f32 %v1306_v55, %v3024_v26  ;;  %v1308_v61 = vpop.f32.mrb[54].mxu0 }
 0x23f   : > { %3755 = vst [vmem:[#allocation15_spill] sm:$0xff] %v3171_v52  ;;  %v3177_v62 = vadd.f32 %v1308_v61, %v3022_v25  ;;  %v1310_v1 = vpop.f32.mrb[55].mxu0 }
 0x240   : > { %3756 = vst [vmem:[#allocation16_spill] sm:$0xff] %v3174_v59  ;;  %v3180_v5 = vadd.f32 %v1310_v1, %v3024_v26  ;;  %v1427_v8 = vmax.f32 %v3171_v52, %v3174_v59 }
 0x241   : > { %3757 = vst [vmem:[#allocation17_spill] sm:$0xff] %v3177_v62 }
 0x242   : > { %3758 = vst [vmem:[#allocation18_spill] sm:$0xff] %v3180_v5  ;;  %1428 = vmax.xlane.f32.xlu1 %v1427_v8  ;;  %v1430_v11 = vmax.f32 %v3177_v62, %v3180_v5 }
 0x244   : > { %v1314_v13 = vpop.f32.mrb[56].mxu0  ;;  %1431 = vmax.xlane.f32.xlu0 %v1430_v11 }
 0x245   : > { %v3187_v16 = vadd.f32 %v1314_v13, %v3022_v25  ;;  %v1316_v19 = vpop.f32.mrb[57].mxu0 }
 0x246   : > { %v3190_v23 = vadd.f32 %v1316_v19, %v3024_v26  ;;  %v1318_v35 = vpop.f32.mrb[58].mxu0 }
 0x247   : > { %3759 = vst [vmem:[#allocation19_spill] sm:$0xff] %v3187_v16  ;;  %v3193_v43 = vadd.f32 %v1318_v35, %v3022_v25  ;;  %v1320_v45 = vpop.f32.mrb[59].mxu0 }
 0x248   : > { %3760 = vst [vmem:[#allocation20_spill] sm:$0xff] %v3190_v23  ;;  %v3196_v48 = vadd.f32 %v1320_v45, %v3024_v26  ;;  %v1433_v55 = vmax.f32 %v3187_v16, %v3190_v23 }
 0x249   : > { %3761 = vst [vmem:[#allocation21_spill] sm:$0xff] %v3193_v43 }
 0x24a   : > { %3762 = vst [vmem:[#allocation22_spill] sm:$0xff] %v3196_v48  ;;  %1434 = vmax.xlane.f32.xlu1 %v1433_v55  ;;  %v1436_v61 = vmax.f32 %v3193_v43, %v3196_v48 }
 0x24c   : > { %v1324_v1 = vpop.f32.mrb[60].mxu0  ;;  %1437 = vmax.xlane.f32.xlu0 %v1436_v61 }
 0x24d   : > { %v3203_v8 = vadd.f32 %v1324_v1, %v3022_v25  ;;  %v1326_v11 = vpop.f32.mrb[61].mxu0 }
 0x24e   : > { %v3206_v13 = vadd.f32 %v1326_v11, %v3024_v26  ;;  %v1328_v19 = vpop.f32.mrb[62].mxu0 }
 0x24f   : > { %3763 = vst [vmem:[#allocation23_spill] sm:$0xff] %v3203_v8  ;;  %v3209_v35 = vadd.f32 %v1328_v19, %v3022_v25  ;;  %v1330_v45 = vpop.f32.mrb[63].mxu0 }
 0x250   : > { %3764 = vst [vmem:[#allocation24_spill] sm:$0xff] %v3206_v13  ;;  %v3212_v39 = vadd.f32 %v1330_v45, %v3024_v26  ;;  %v1439_v55 = vmax.f32 %v3203_v8, %v3206_v13 }
 0x251   : > { %3765 = vst [vmem:[#allocation25_spill] sm:$0xff] %v3209_v35 }
 0x252   : > { %3766 = vst [vmem:[#allocation26_spill] sm:$0xff] %v3212_v39  ;;  %1440 = vmax.xlane.f32.xlu1 %v1439_v55  ;;  %v1442_v61 = vmax.f32 %v3209_v35, %v3212_v39 }
 0x254   : > { %1443 = vmax.xlane.f32.xlu0 %v1442_v61  ;;  %v1334_v1 = vpop.f32.mrb[64].mxu0 }
 0x255   : > { %v1336_v42 = vpop.f32.mrb[65].mxu0 }
 0x256   : > { %v1338_v11 = vpop.f32.mrb[66].mxu0 }
 0x257   : > { %v1340_v27 = vpop.f32.mrb[67].mxu0 }
 0x25c   : > { %v3218_v32 = vpop.f32.mrb[68].mxu0 }
 0x25d   : > { %v3220_v19 = vpop.f32.mrb[69].mxu0 }
 0x25e   : > { %v3222_v36 = vpop.f32.mrb[70].mxu0 }
 0x25f   : > { %v3224_v45 = vpop.f32.mrb[71].mxu0 }
 0x264   : > { %v3226_v34 = vpop.f32.mrb[72].mxu0 }
 0x265   : > { %v3228_v40 = vpop.f32.mrb[73].mxu0 }
 0x266   : > { %v3230_v55 = vpop.f32.mrb[74].mxu0 }
 0x267   : > { %v3232_v20 = vpop.f32.mrb[75].mxu0 }
 0x26c   : > { %v3234_v61 = vpop.f32.mrb[76].mxu0 }
 0x26d   : > { %v3236_v24 = vpop.f32.mrb[77].mxu0 }
 0x26e   : > { %v3238_v39 = vpop.f32.mrb[78].mxu0 }
 0x26f   : > { %v3240_v35 = vpop.f32.mrb[79].mxu0 }
 0x287   : > { %v1375_v13 = vpop.xlane.xlu0 %1374 }
 0x288   : > { %v1469_v8 = vsub.f32 %v3027_v14, %v1375_v13  ;;  %v1470_v48 = vsub.f32 %v3030_v30, %v1375_v13 }
 0x289   : > { %v1378_v43 = vpop.xlane.xlu1 %1377 }
 0x28a   : > { %v1533_v23 = vmul.f32 1.442695, %v1469_v8  ;;  %v1535_v16 = vmul.f32 1.442695, %v1470_v48  ;;  %v1471_v5 = vsub.f32 %v3033_v33, %v1378_v43  ;;  %v1472_v62 = vsub.f32 %v3036_v37, %v1378_v43 }
 0x28b   : > { %v3251_v37 = vadd.f32 %v1334_v1, %v3022_v25 }
 0x28c   : > { %2362 = vpow2.f32 %v1533_v23  ;;  %v1537_v59 = vmul.f32 1.442695, %v1471_v5  ;;  %v1539_v52 = vmul.f32 1.442695, %v1472_v62 }
 0x28d   : > { %2364 = vpow2.f32 %v1535_v16 }
 0x28e   : > { %2366 = vpow2.f32 %v1537_v59  ;;  %v3254_v59 = vadd.f32 %v1336_v42, %v3024_v26 }
 0x28f   : > { %2368 = vpow2.f32 %v1539_v52  ;;  %v1381_v41 = vpop.xlane.xlu0 %1380 }
 0x290   : > { %v1473_v29 = vsub.f32 %v3043_v44, %v1381_v41  ;;  %v1474_v14 = vsub.f32 %v3046_v46, %v1381_v41  ;;  %v1445_v16 = vmax.f32 %v3251_v37, %v3254_v59 }
 0x292   : > { %v1541_v21 = vmul.f32 1.442695, %v1473_v29  ;;  %v1543_v30 = vmul.f32 1.442695, %v1474_v14 }
 0x293   : > { %v1384_v13 = vpop.xlane.xlu0 %1383 }
 0x294   : > { %2370 = vpow2.f32 %v1541_v21  ;;  %v1475_v48 = vsub.f32 %v3049_v49, %v1384_v13  ;;  %v1476_v33 = vsub.f32 %v3052_v50, %v1384_v13 }
 0x295   : > { %2372 = vpow2.f32 %v1543_v30 }
 0x296   : > { %v3256_v52 = vpop.eup %2362  ;;  %v1545_v44 = vmul.f32 1.442695, %v1475_v48  ;;  %v1547_v62 = vmul.f32 1.442695, %v1476_v33  ;;  %v3282_v48 = vadd.f32 %v3218_v32, %v3022_v25 }
 0x297   : > { %v3258_v46 = vpop.eup %2364  ;;  %v1387_v29 = vpop.xlane.xlu1 %1386 }
 0x298   : > { %v3260_v41 = vpop.eup %2366  ;;  %2374 = vpow2.f32 %v1545_v44  ;;  %v1477_v49 = vsub.f32 %v3059_v54, %v1387_v29  ;;  %v1478_v50 = vsub.f32 %v3062_v56, %v1387_v29  ;;  %v1661_v21 = vadd.f32 %v3258_v46, %v3256_v52 }
 0x299   : > { %v3266_v5 = vpop.eup %2368  ;;  %2376 = vpow2.f32 %v1547_v62  ;;  %v1390_v42 = vpop.xlane.xlu0 %1389  ;;  %v3273_v54 = vadd.f32 %v1338_v11, %v3022_v25  ;;  %v3276_v56 = vadd.f32 %v1340_v27, %v3024_v26 }
 0x29a   : > { %v1549_v23 = vmul.f32 1.442695, %v1477_v49  ;;  %v1551_v43 = vmul.f32 1.442695, %v1478_v50  ;;  %1662 = vadd.xlane.f32.xlu1 %v1661_v21  ;;  %v1479_v8 = vsub.f32 %v3065_v58, %v1390_v42  ;;  %v1480_v1 = vsub.f32 %v3068_v60, %v1390_v42 }
 0x29b   : > { %v1664_v14 = vadd.f32 %v3266_v5, %v3260_v41  ;;  %v3286_v58 = vadd.f32 %v3220_v19, %v3024_v26  ;;  %v1448_v33 = vmax.f32 %v3273_v54, %v3276_v56 }
 0x29c   : > { %2378 = vpow2.f32 %v1549_v23  ;;  %v1553_v30 = vmul.f32 1.442695, %v1479_v8  ;;  %v1555_v13 = vmul.f32 1.442695, %v1480_v1  ;;  %v3312_v23 = vadd.f32 %v3224_v45, %v3024_v26 }
 0x29d   : > { %2380 = vpow2.f32 %v1551_v43  ;;  %1665 = vadd.xlane.f32.xlu0 %v1664_v14  ;;  %v1451_v29 = vmax.f32 %v3282_v48, %v3286_v58 }
 0x29e   : > { %v3288_v60 = vpop.eup %2370  ;;  %2382 = vpow2.f32 %v1553_v30  ;;  %1446 = vmax.xlane.f32.xlu1 %v1445_v16 }
 0x29f   : > { %v3290_v27 = vpop.eup %2372  ;;  %2384 = vpow2.f32 %v1555_v13  ;;  %v1393_v11 = vpop.xlane.xlu1 %1392 }
 0x2a0   : > { %v1481_v44 = vsub.f32 %v3075_v0, %v1393_v11  ;;  %v1482_v32 = vsub.f32 %v3078_v2, %v1393_v11  ;;  %v1667_v62 = vadd.f32 %v3290_v27, %v3288_v60  ;;  %v3308_v2 = vadd.f32 %v3222_v36, %v3022_v25 }
 0x2a1   : > { %1449 = vmax.xlane.f32.xlu0 %v1448_v33  ;;  %v1396_v19 = vpop.xlane.xlu0 %1395 }
 0x2a2   : > { %v3300_v49 = vpop.eup %2374  ;;  %v1557_v50 = vmul.f32 1.442695, %v1481_v44  ;;  %v1559_v21 = vmul.f32 1.442695, %v1482_v32  ;;  %1668 = vadd.xlane.f32.xlu1 %v1667_v62  ;;  %v1483_v42 = vsub.f32 %v3081_v4, %v1396_v19  ;;  %v1484_v16 = vsub.f32 %v3084_v6, %v1396_v19 }
 0x2a3   : > { %v3304_v0 = vpop.eup %2376  ;;  %v3318_v4 = vadd.f32 %v3226_v34, %v3022_v25  ;;  %v3322_v6 = vadd.f32 %v3228_v40, %v3024_v26  ;;  %v1454_v40 = vmax.f32 %v3308_v2, %v3312_v23 }
 0x2a4   : > { %2386 = vpow2.f32 %v1557_v50  ;;  %v1561_v43 = vmul.f32 1.442695, %v1483_v42  ;;  %v1563_v8 = vmul.f32 1.442695, %v1484_v16  ;;  %v1670_v1 = vadd.f32 %v3304_v0, %v3300_v49 }
 0x2a5   : > { %2388 = vpow2.f32 %v1559_v21  ;;  %v1457_v32 = vmax.f32 %v3318_v4, %v3322_v6  ;;  %v3348_v50 = vadd.f32 %v3232_v20, %v3024_v26 }
 0x2a6   : > { %v3324_v36 = vpop.eup %2378  ;;  %2390 = vpow2.f32 %v1561_v43  ;;  %1452 = vmax.xlane.f32.xlu1 %v1451_v29  ;;  %1671 = vadd.xlane.f32.xlu0 %v1670_v1  ;;  %v3344_v29 = vadd.f32 %v3230_v55, %v3022_v25 }
 0x2a7   : > { %v3326_v45 = vpop.eup %2380  ;;  %2392 = vpow2.f32 %v1563_v8  ;;  %v1399_v14 = vpop.xlane.xlu1 %1398 }
 0x2a8   : > { %v3328_v30 = vpop.eup %2382  ;;  %v1485_v13 = vsub.f32 %v3091_v10, %v1399_v14  ;;  %v1486_v34 = vsub.f32 %v3094_v12, %v1399_v14  ;;  %v1673_v11 = vadd.f32 %v3326_v45, %v3324_v36 }
 0x2a9   : > { %v3336_v33 = vpop.eup %2384  ;;  %v1402_v44 = vpop.xlane.xlu0 %1401 }
 0x2aa   : > { %v1565_v62 = vmul.f32 1.442695, %v1485_v13  ;;  %v1567_v19 = vmul.f32 1.442695, %v1486_v34  ;;  %1674 = vadd.xlane.f32.xlu1 %v1673_v11  ;;  %1455 = vmax.xlane.f32.xlu0 %v1454_v40  ;;  %v1487_v10 = vsub.f32 %v3097_v15, %v1402_v44  ;;  %v1488_v12 = vsub.f32 %v3100_v17, %v1402_v44 }
 0x2ab   : > { %v1676_v16 = vadd.f32 %v3336_v33, %v3328_v30  ;;  %v3354_v15 = vadd.f32 %v3234_v61, %v3022_v25  ;;  %v3358_v17 = vadd.f32 %v3236_v24, %v3024_v26  ;;  %v1460_v24 = vmax.f32 %v3344_v29, %v3348_v50 }
 0x2ac   : > { %2394 = vpow2.f32 %v1565_v62  ;;  %v1569_v21 = vmul.f32 1.442695, %v1487_v10  ;;  %v1571_v42 = vmul.f32 1.442695, %v1488_v12  ;;  %v3384_v62 = vadd.f32 %v3240_v35, %v3024_v26 }
 0x2ad   : > { %2396 = vpow2.f32 %v1567_v19  ;;  %v1463_v11 = vmax.f32 %v3354_v15, %v3358_v17 }
 0x2ae   : > { %v3360_v55 = vpop.eup %2386  ;;  %2398 = vpow2.f32 %v1569_v21  ;;  %1458 = vmax.xlane.f32.xlu1 %v1457_v32  ;;  %1677 = vadd.xlane.f32.xlu0 %v1676_v16  ;;  %v3380_v32 = vadd.f32 %v3238_v39, %v3022_v25 }
 0x2af   : > { %v3362_v20 = vpop.eup %2388  ;;  %2400 = vpow2.f32 %v1571_v42  ;;  %v1405_v43 = vpop.xlane.xlu1 %1404 }
 0x2b0   : > { %v3364_v8 = vpop.eup %2390  ;;  %v1489_v1 = vsub.f32 %v3107_v22, %v1405_v43  ;;  %v1490_v61 = vsub.f32 %v3110_v28, %v1405_v43  ;;  %v1679_v14 = vadd.f32 %v3362_v20, %v3360_v55  ;;  %v1466_v42 = vmax.f32 %v3380_v32, %v3384_v62 }
 0x2b1   : > { %v3372_v13 = vpop.eup %2392  ;;  %v1408_v34 = vpop.xlane.xlu0 %1407 }
 0x2b2   : > { %v1573_v40 = vmul.f32 1.442695, %v1489_v1  ;;  %v1575_v44 = vmul.f32 1.442695, %v1490_v61  ;;  %1680 = vadd.xlane.f32.xlu1 %v1679_v14  ;;  %1461 = vmax.xlane.f32.xlu0 %v1460_v24  ;;  %v1491_v22 = vsub.f32 %v3113_v31, %v1408_v34  ;;  %v1492_v28 = vsub.f32 %v3116_v38, %v1408_v34 }
 0x2b3   : > { %v1682_v12 = vadd.f32 %v3372_v13, %v3364_v8 }
 0x2b4   : > { %2402 = vpow2.f32 %v1573_v40  ;;  %v1577_v19 = vmul.f32 1.442695, %v1491_v22  ;;  %v1579_v10 = vmul.f32 1.442695, %v1492_v28 }
 0x2b5   : > { %2404 = vpow2.f32 %v1575_v44 }
 0x2b6   : > { %v3388_v21 = vpop.eup %2394  ;;  %2406 = vpow2.f32 %v1577_v19  ;;  %1464 = vmax.xlane.f32.xlu1 %v1463_v11  ;;  %1683 = vadd.xlane.f32.xlu0 %v1682_v12 }
 0x2b7   : > { %v3390_v31 = vpop.eup %2396  ;;  %2408 = vpow2.f32 %v1579_v10  ;;  %v1411_v39 = vpop.xlane.xlu1 %1410 }
 0x2b8   : > { %v3392_v25 = vpop.eup %2398  ;;  %v1493_v26 = vsub.f32 %v3123_v47, %v1411_v39  ;;  %v1494_v38 = vsub.f32 %v3126_v51, %v1411_v39  ;;  %v1685_v35 = vadd.f32 %v3390_v31, %v3388_v21 }
 0x2b9   : > { %v3400_v16 = vpop.eup %2400  ;;  %v1414_v43 = vpop.xlane.xlu0 %1413 }
 0x2ba   : > { %v1581_v1 = vmul.f32 1.442695, %v1493_v26  ;;  %v1583_v61 = vmul.f32 1.442695, %v1494_v38  ;;  %1686 = vadd.xlane.f32.xlu1 %v1685_v35  ;;  %1467 = vmax.xlane.f32.xlu0 %v1466_v42  ;;  %v1495_v14 = vsub.f32 %v3129_v53, %v1414_v43  ;;  %v1496_v24 = vsub.f32 %v3132_v57, %v1414_v43 }
 0x2bb   : > { %v1688_v34 = vadd.f32 %v3400_v16, %v3392_v25 }
 0x2bc   : > { %2410 = vpow2.f32 %v1581_v1  ;;  %v1585_v47 = vmul.f32 1.442695, %v1495_v14  ;;  %v1587_v51 = vmul.f32 1.442695, %v1496_v24 }
 0x2bd   : > { %2412 = vpow2.f32 %v1583_v61 }
 0x2be   : > { %v3406_v11 = vpop.eup %2402  ;;  %2414 = vpow2.f32 %v1585_v47  ;;  %1689 = vadd.xlane.f32.xlu0 %v1688_v34 }
 0x2bf   : > { %v3408_v40 = vpop.eup %2404  ;;  %2416 = vpow2.f32 %v1587_v51  ;;  %v1417_v44 = vpop.xlane.xlu1 %1416 }
 0x2c0   : > { %v3410_v22 = vpop.eup %2406  ;;  %v1497_v53 = vsub.f32 %v3139_v63, %v1417_v44  ;;  %v1498_v57 = vsub.f32 %v3142_v3, %v1417_v44  ;;  %v1691_v28 = vadd.f32 %v3408_v40, %v3406_v11 }
 0x2c1   : > { %v3416_v19 = vpop.eup %2408  ;;  %v1420_v10 = vpop.xlane.xlu0 %1419 }
 0x2c2   : > { %v1589_v12 = vmul.f32 1.442695, %v1497_v53  ;;  %v1591_v39 = vmul.f32 1.442695, %v1498_v57  ;;  %1692 = vadd.xlane.f32.xlu1 %v1691_v28  ;;  %v1499_v26 = vsub.f32 %v3145_v7, %v1420_v10  ;;  %v1500_v38 = vsub.f32 %v3148_v9, %v1420_v10  ;;  %v3767_v9 = vld [vmem:[#allocation12_spill] sm:$0xff]  ;;  %v3768_v53 = vld [vmem:[#allocation13_spill] sm:$0xff] }
 0x2c3   : > { %v1694_v35 = vadd.f32 %v3416_v19, %v3410_v22  ;;  %v3769_v28 = vld [vmem:[#allocation14_spill] sm:$0xff] }
 0x2c4   : > { %2418 = vpow2.f32 %v1589_v12  ;;  %v1593_v63 = vmul.f32 1.442695, %v1499_v26  ;;  %v1595_v42 = vmul.f32 1.442695, %v1500_v38 }
 0x2c5   : > { %2420 = vpow2.f32 %v1591_v39  ;;  %1695 = vadd.xlane.f32.xlu0 %v1694_v35 }
 0x2c6   : > { %v3422_v3 = vpop.eup %2410  ;;  %2422 = vpow2.f32 %v1593_v63 }
 0x2c7   : > { %v3424_v43 = vpop.eup %2412  ;;  %2424 = vpow2.f32 %v1595_v42  ;;  %v1423_v1 = vpop.xlane.xlu1 %1422  ;;  %v3772_v42 = vld [vmem:[#allocation15_spill] sm:$0xff] }
 0x2c8   : > { %v3426_v61 = vpop.eup %2414  ;;  %v1501_v7 = vsub.f32 %v3155_v18, %v1423_v1  ;;  %v1502_v14 = vsub.f32 %v3767_v9, %v1423_v1  ;;  %v1697_v24 = vadd.f32 %v3424_v43, %v3422_v3 }
 0x2c9   : > { %v3432_v47 = vpop.eup %2416  ;;  %v1426_v51 = vpop.xlane.xlu0 %1425 }
 0x2ca   : > { %v1597_v34 = vmul.f32 1.442695, %v1501_v7  ;;  %v1599_v44 = vmul.f32 1.442695, %v1502_v14  ;;  %1698 = vadd.xlane.f32.xlu1 %v1697_v24  ;;  %v1503_v57 = vsub.f32 %v3768_v53, %v1426_v51  ;;  %v1504_v10 = vsub.f32 %v3769_v28, %v1426_v51  ;;  %v3773_v7 = vld [vmem:[#allocation16_spill] sm:$0xff]  ;;  %v3775_v53 = vld [vmem:[#allocation17_spill] sm:$0xff] }
 0x2cb   : > { %v1700_v12 = vadd.f32 %v3432_v47, %v3426_v61  ;;  %v3776_v28 = vld [vmem:[#allocation18_spill] sm:$0xff] }
 0x2cc   : > { %2426 = vpow2.f32 %v1597_v34  ;;  %v1601_v18 = vmul.f32 1.442695, %v1503_v57  ;;  %v1603_v39 = vmul.f32 1.442695, %v1504_v10 }
 0x2cd   : > { %2428 = vpow2.f32 %v1599_v44  ;;  %1701 = vadd.xlane.f32.xlu0 %v1700_v12 }
 0x2ce   : > { %v3438_v26 = vpop.eup %2418  ;;  %2430 = vpow2.f32 %v1601_v18 }
 0x2cf   : > { %3770 = vst [vmem:[#allocation12_spill] sm:$0xff] %v3438_v26  ;;  %v3440_v38 = vpop.eup %2420  ;;  %2432 = vpow2.f32 %v1603_v39  ;;  %v1429_v35 = vpop.xlane.xlu1 %1428 }
 0x2d0   : > { %v3442_v63 = vpop.eup %2422  ;;  %v1505_v1 = vsub.f32 %v3772_v42, %v1429_v35  ;;  %v1506_v9 = vsub.f32 %v3773_v7, %v1429_v35  ;;  %v1703_v14 = vadd.f32 %v3440_v38, %v3438_v26  ;;  %v3784_v26 = vld [vmem:[#allocation22_spill] sm:$0xff] }
 0x2d1   : > { %3771 = vst [vmem:[#allocation13_spill] sm:$0xff] %v3442_v63  ;;  %v3448_v24 = vpop.eup %2424  ;;  %v1432_v51 = vpop.xlane.xlu0 %1431 }
 0x2d2   : > { %3774 = vst [vmem:[#allocation14_spill] sm:$0xff] %v3448_v24  ;;  %v1605_v34 = vmul.f32 1.442695, %v1505_v1  ;;  %v1607_v44 = vmul.f32 1.442695, %v1506_v9  ;;  %1704 = vadd.xlane.f32.xlu1 %v1703_v14  ;;  %v1507_v57 = vsub.f32 %v3775_v53, %v1432_v51  ;;  %v1508_v10 = vsub.f32 %v3776_v28, %v1432_v51  ;;  %v3780_v9 = vld [vmem:[#allocation19_spill] sm:$0xff] }
 0x2d3   : > { %v1706_v12 = vadd.f32 %v3448_v24, %v3442_v63  ;;  %v3781_v51 = vld [vmem:[#allocation20_spill] sm:$0xff] }
 0x2d4   : > { %2434 = vpow2.f32 %v1605_v34  ;;  %v1609_v18 = vmul.f32 1.442695, %v1507_v57  ;;  %v1611_v39 = vmul.f32 1.442695, %v1508_v10 }
 0x2d5   : > { %2436 = vpow2.f32 %v1607_v44  ;;  %1707 = vadd.xlane.f32.xlu0 %v1706_v12  ;;  %v3783_v12 = vld [vmem:[#allocation21_spill] sm:$0xff] }
 0x2d6   : > { %v3454_v35 = vpop.eup %2426  ;;  %2438 = vpow2.f32 %v1609_v18 }
 0x2d7   : > { %3777 = vst [vmem:[#allocation15_spill] sm:$0xff] %v3454_v35  ;;  %v3456_v42 = vpop.eup %2428  ;;  %2440 = vpow2.f32 %v1611_v39  ;;  %v1435_v1 = vpop.xlane.xlu1 %1434 }
 0x2d8   : > { %3778 = vst [vmem:[#allocation16_spill] sm:$0xff] %v3456_v42  ;;  %v3458_v7 = vpop.eup %2430  ;;  %v1509_v14 = vsub.f32 %v3780_v9, %v1435_v1  ;;  %v1510_v53 = vsub.f32 %v3781_v51, %v1435_v1  ;;  %v1709_v34 = vadd.f32 %v3456_v42, %v3454_v35 }
 0x2d9   : > { %3779 = vst [vmem:[#allocation17_spill] sm:$0xff] %v3458_v7  ;;  %v3464_v57 = vpop.eup %2432  ;;  %v1438_v44 = vpop.xlane.xlu0 %1437 }
 0x2da   : > { %3782 = vst [vmem:[#allocation18_spill] sm:$0xff] %v3464_v57  ;;  %v1613_v28 = vmul.f32 1.442695, %v1509_v14  ;;  %v1615_v10 = vmul.f32 1.442695, %v1510_v53  ;;  %1710 = vadd.xlane.f32.xlu1 %v1709_v34  ;;  %v1511_v18 = vsub.f32 %v3783_v12, %v1438_v44  ;;  %v1512_v39 = vsub.f32 %v3784_v26, %v1438_v44  ;;  %v3785_v34 = vld [vmem:[#allocation23_spill] sm:$0xff] }
 0x2db   : > { %v1712_v63 = vadd.f32 %v3464_v57, %v3458_v7  ;;  %v3786_v26 = vld [vmem:[#allocation24_spill] sm:$0xff]  ;;  %v3788_v7 = vld [vmem:[#allocation26_spill] sm:$0xff] }
 0x2dc   : > { %2442 = vpow2.f32 %v1613_v28  ;;  %v1617_v9 = vmul.f32 1.442695, %v1511_v18  ;;  %v1619_v24 = vmul.f32 1.442695, %v1512_v39 }
 0x2dd   : > { %2444 = vpow2.f32 %v1615_v10  ;;  %1713 = vadd.xlane.f32.xlu0 %v1712_v63 }
 0x2de   : > { %v3470_v1 = vpop.eup %2434  ;;  %2446 = vpow2.f32 %v1617_v9  ;;  %v3787_v9 = vld [vmem:[#allocation25_spill] sm:$0xff] }
 0x2df   : > { %v3472_v51 = vpop.eup %2436  ;;  %2448 = vpow2.f32 %v1619_v24  ;;  %v1441_v14 = vpop.xlane.xlu1 %1440 }
 0x2e0   : > { %v3474_v53 = vpop.eup %2438  ;;  %v1513_v12 = vsub.f32 %v3785_v34, %v1441_v14  ;;  %v1514_v44 = vsub.f32 %v3786_v26, %v1441_v14  ;;  %v1715_v28 = vadd.f32 %v3472_v51, %v3470_v1 }
 0x2e1   : > { %v3480_v18 = vpop.eup %2440  ;;  %v1444_v10 = vpop.xlane.xlu0 %1443 }
 0x2e2   : > { %v1621_v63 = vmul.f32 1.442695, %v1513_v12  ;;  %v1623_v39 = vmul.f32 1.442695, %v1514_v44  ;;  %1716 = vadd.xlane.f32.xlu1 %v1715_v28  ;;  %v1515_v35 = vsub.f32 %v3787_v9, %v1444_v10  ;;  %v1516_v24 = vsub.f32 %v3788_v7, %v1444_v10 }
 0x2e3   : > { %v1718_v57 = vadd.f32 %v3480_v18, %v3474_v53 }
 0x2e4   : > { %2450 = vpow2.f32 %v1621_v63  ;;  %v1625_v34 = vmul.f32 1.442695, %v1515_v35  ;;  %v1627_v42 = vmul.f32 1.442695, %v1516_v24 }
 0x2e5   : > { %2452 = vpow2.f32 %v1623_v39  ;;  %1719 = vadd.xlane.f32.xlu0 %v1718_v57 }
 0x2e6   : > { %v3486_v14 = vpop.eup %2442  ;;  %2454 = vpow2.f32 %v1625_v34 }
 0x2e7   : > { %3789 = vst [vmem:[#allocation19_spill] sm:$0xff] %v3486_v14  ;;  %v3488_v26 = vpop.eup %2444  ;;  %2456 = vpow2.f32 %v1627_v42 }
 0x2e8   : > { %v3490_v12 = vpop.eup %2446  ;;  %v1721_v44 = vadd.f32 %v3488_v26, %v3486_v14 }
 0x2e9   : > { %3790 = vst [vmem:[#allocation20_spill] sm:$0xff] %v3490_v12  ;;  %v3494_v7 = vpop.eup %2448 }
 0x2ea   : > { %3791 = vst [vmem:[#allocation21_spill] sm:$0xff] %v3494_v7  ;;  %1722 = vadd.xlane.f32.xlu1 %v1721_v44  ;;  %v1724_v35 = vadd.f32 %v3494_v7, %v3490_v12 }
 0x2ec   : > { %1725 = vadd.xlane.f32.xlu0 %v1724_v35 }
 0x2ee   : > { %v3498_v28 = vpop.eup %2450 }
 0x2ef   : > { %3792 = vst [vmem:[#allocation22_spill] sm:$0xff] %v3498_v28  ;;  %v3500_v57 = vpop.eup %2452 }
 0x2f0   : > { %3793 = vst [vmem:[#allocation23_spill] sm:$0xff] %v3500_v57  ;;  %v3502_v10 = vpop.eup %2454  ;;  %v1727_v42 = vadd.f32 %v3500_v57, %v3498_v28 }
 0x2f1   : > { %3794 = vst [vmem:[#allocation24_spill] sm:$0xff] %v3502_v10  ;;  %v3506_v63 = vpop.eup %2456 }
 0x2f2   : > { %3795 = vst [vmem:[#allocation25_spill] sm:$0xff] %v3506_v63  ;;  %1728 = vadd.xlane.f32.xlu1 %v1727_v42  ;;  %v1730_v39 = vadd.f32 %v3506_v63, %v3502_v10 }
 0x2f4   : > { %1731 = vadd.xlane.f32.xlu0 %v1730_v39 }
 0x327   : > { %v1663_v9 = vpop.xlane.xlu1 %1662 }
 0x328   : > { %2458 = vrcp.f32 %v1663_v9 }
 0x32a   : > { %v1666_v24 = vpop.xlane.xlu0 %1665 }
 0x32b   : > { %2460 = vrcp.f32 %v1666_v24  ;;  %v1447_v34 = vpop.xlane.xlu1 %1446 }
 0x32c   : > { %v1517_v44 = vsub.f32 %v3251_v37, %v1447_v34  ;;  %v1518_v35 = vsub.f32 %v3254_v59, %v1447_v34 }
 0x32e   : > { %v1629_v14 = vmul.f32 1.442695, %v1517_v44  ;;  %v1631_v12 = vmul.f32 1.442695, %v1518_v35  ;;  %v1450_v7 = vpop.xlane.xlu0 %1449 }
 0x32f   : > { %v1519_v28 = vsub.f32 %v3273_v54, %v1450_v7  ;;  %v1520_v42 = vsub.f32 %v3276_v56, %v1450_v7  ;;  %v1669_v57 = vpop.xlane.xlu1 %1668 }
 0x330   : > { %2462 = vpow2.f32 %v1629_v14 }
 0x331   : > { %2464 = vpow2.f32 %v1631_v12  ;;  %v1633_v39 = vmul.f32 1.442695, %v1519_v28  ;;  %v1635_v10 = vmul.f32 1.442695, %v1520_v42 }
 0x332   : > { %v2459_v9 = vpop.eup %2458  ;;  %2466 = vrcp.f32 %v1669_v57 }
 0x333   : > { %2468 = vpow2.f32 %v1633_v39  ;;  %v1453_v24 = vpop.xlane.xlu1 %1452  ;;  %v1672_v63 = vpop.xlane.xlu0 %1671  ;;  %v1790_v54 = vmul.f32 %v2459_v9, %v3258_v46  ;;  %v1789_v44 = vmul.f32 %v2459_v9, %v3256_v52 }
 0x334   : > { %2470 = vpow2.f32 %v1635_v10  ;;  %v1521_v37 = vsub.f32 %v3282_v48, %v1453_v24  ;;  %v1522_v59 = vsub.f32 %v3286_v58, %v1453_v24 }
 0x335   : > { %v2461_v34 = vpop.eup %2460  ;;  %2472 = vrcp.f32 %v1672_v63 }
 0x336   : > { %v1637_v56 = vmul.f32 1.442695, %v1521_v37  ;;  %v1639_v7 = vmul.f32 1.442695, %v1522_v59  ;;  %v1792_v14 = vmul.f32 %v2461_v34, %v3266_v5  ;;  %v1791_v12 = vmul.f32 %v2461_v34, %v3260_v41 }
 0x337   : > { %v1675_v28 = vpop.xlane.xlu1 %1674  ;;  %v1456_v57 = vpop.xlane.xlu0 %1455 }
 0x338   : > { %2474 = vpow2.f32 %v1637_v56  ;;  %v1523_v10 = vsub.f32 %v3308_v2, %v1456_v57  ;;  %v1524_v48 = vsub.f32 %v3312_v23, %v1456_v57  ;;  %v1854_v58 = vpack.c.bf16 %v1792_v14, %v1790_v54 }
 0x339   : > { %2476 = vpow2.f32 %v1639_v7  ;;  %v1853_v63 = vpack.c.bf16 %v1791_v12, %v1789_v44 }
 0x33a   : > { %v3522_v35 = vpop.eup %2462  ;;  %2478 = vrcp.f32 %v1675_v28  ;;  %v1641_v46 = vmul.f32 1.442695, %v1523_v10  ;;  %v1643_v42 = vmul.f32 1.442695, %v1524_v48  ;;  %1889 = vmatprep.subr.bf16.mxu1 %v1854_v58 }
 0x33b   : > { %v3524_v5 = vpop.eup %2464  ;;  %1890 = vmatpush1.bf16.xpose.msra.mxu1 %v1853_v63  ;;  %v1459_v41 = vpop.xlane.xlu1 %1458 }
 0x33c   : > { %v1678_v39 = vpop.xlane.xlu0 %1677  ;;  %v2467_v52 = vpop.eup %2466  ;;  %2480 = vpow2.f32 %v1641_v46  ;;  %v1525_v2 = vsub.f32 %v3318_v4, %v1459_v41  ;;  %v1526_v23 = vsub.f32 %v3322_v6, %v1459_v41  ;;  %v1733_v9 = vadd.f32 %v3524_v5, %v3522_v35 }
 0x33d   : > { %v3530_v24 = vpop.eup %2468  ;;  %2482 = vpow2.f32 %v1643_v42  ;;  %v1794_v6 = vmul.f32 %v2467_v52, %v3290_v27  ;;  %v1793_v57 = vmul.f32 %v2467_v52, %v3288_v60 }
 0x33e   : > { %v3532_v37 = vpop.eup %2470  ;;  %v1645_v59 = vmul.f32 1.442695, %v1525_v2  ;;  %v1647_v34 = vmul.f32 1.442695, %v1526_v23  ;;  %2484 = vrcp.f32 %v1678_v39  ;;  %1734 = vadd.xlane.f32.xlu1 %v1733_v9 }
 0x33f   : > { %v2473_v54 = vpop.eup %2472  ;;  %v1681_v56 = vpop.xlane.xlu1 %1680  ;;  %v1736_v7 = vadd.f32 %v3532_v37, %v3530_v24 }
 0x340   : > { %v1462_v4 = vpop.xlane.xlu0 %1461  ;;  %2486 = vpow2.f32 %v1645_v59  ;;  %v1796_v28 = vmul.f32 %v2473_v54, %v3304_v0  ;;  %v1795_v44 = vmul.f32 %v2473_v54, %v3300_v49 }
 0x341   : > { %v1527_v14 = vsub.f32 %v3344_v29, %v1462_v4  ;;  %v1528_v12 = vsub.f32 %v3348_v50, %v1462_v4  ;;  %2488 = vpow2.f32 %v1647_v34  ;;  %1737 = vadd.xlane.f32.xlu0 %v1736_v7 }
 0x342   : > { %v3542_v10 = vpop.eup %2474  ;;  %v1856_v63 = vpack.c.bf16 %v1796_v28, %v1794_v6  ;;  %2490 = vrcp.f32 %v1681_v56  ;;  %v1855_v42 = vpack.c.bf16 %v1795_v44, %v1793_v57 }
 0x343   : > { %v1649_v48 = vmul.f32 1.442695, %v1527_v14  ;;  %v1651_v58 = vmul.f32 1.442695, %v1528_v12  ;;  %v3544_v46 = vpop.eup %2476  ;;  %v1465_v27 = vpop.xlane.xlu1 %1464 }
 0x344   : > { %v1684_v29 = vpop.xlane.xlu0 %1683  ;;  %v2479_v50 = vpop.eup %2478  ;;  %v1529_v0 = vsub.f32 %v3354_v15, %v1465_v27  ;;  %v1530_v41 = vsub.f32 %v3358_v17, %v1465_v27  ;;  %1891 = vmatprep.subr.bf16.mxu1 %v1856_v63  ;;  %v1739_v60 = vadd.f32 %v3544_v46, %v3542_v10 }
 0x345   : > { %2492 = vpow2.f32 %v1649_v48  ;;  %1892 = vmatpush1.bf16.xpose.msra.mxu1 %v1855_v42  ;;  %v1798_v9 = vmul.f32 %v2479_v50, %v3326_v45  ;;  %v1797_v7 = vmul.f32 %v2479_v50, %v3324_v36 }
 0x346   : > { %2494 = vpow2.f32 %v1651_v58  ;;  %v3550_v49 = vpop.eup %2480  ;;  %v1653_v39 = vmul.f32 1.442695, %v1529_v0  ;;  %v1655_v52 = vmul.f32 1.442695, %v1530_v41  ;;  %1740 = vadd.xlane.f32.xlu1 %v1739_v60 }
 0x347   : > { %2496 = vrcp.f32 %v1684_v29  ;;  %v3552_v2 = vpop.eup %2482  ;;  %v1687_v17 = vpop.xlane.xlu1 %1686 }
 0x348   : > { %v1468_v23 = vpop.xlane.xlu0 %1467  ;;  %v2485_v15 = vpop.eup %2484  ;;  %2498 = vpow2.f32 %v1653_v39  ;;  %v1742_v54 = vadd.f32 %v3552_v2, %v3550_v49 }
 0x349   : > { %v1531_v59 = vsub.f32 %v3380_v32, %v1468_v23  ;;  %v1532_v34 = vsub.f32 %v3384_v62, %v1468_v23  ;;  %2500 = vpow2.f32 %v1655_v52  ;;  %v1800_v56 = vmul.f32 %v2485_v15, %v3336_v33 }
 0x34a   : > { %v1799_v4 = vmul.f32 %v2485_v15, %v3328_v30  ;;  %v3562_v6 = vpop.eup %2486  ;;  %1743 = vadd.xlane.f32.xlu0 %v1742_v54  ;;  %2502 = vrcp.f32 %v1687_v17 }
 0x34b   : > { %v1657_v45 = vmul.f32 1.442695, %v1531_v59  ;;  %v1659_v14 = vmul.f32 1.442695, %v1532_v34  ;;  %v3564_v12 = vpop.eup %2488  ;;  %v1858_v32 = vpack.c.bf16 %v1800_v56, %v1798_v9 }
 0x34c   : > { %v1690_v62 = vpop.xlane.xlu0 %1689  ;;  %v1857_v28 = vpack.c.bf16 %v1799_v4, %v1797_v7  ;;  %v1745_v57 = vadd.f32 %v3564_v12, %v3562_v6  ;;  %v2491_v33 = vpop.eup %2490 }
 0x34d   : > { %2504 = vpow2.f32 %v1657_v45  ;;  %1893 = vmatprep.subr.bf16.mxu1 %v1858_v32  ;;  %v1802_v63 = vmul.f32 %v2491_v33, %v3362_v20  ;;  %v1801_v29 = vmul.f32 %v2491_v33, %v3360_v55 }
 0x34e   : > { %2506 = vpow2.f32 %v1659_v14  ;;  %1894 = vmatpush1.bf16.xpose.msra.mxu1 %v1857_v28  ;;  %1746 = vadd.xlane.f32.xlu1 %v1745_v57 }
 0x34f   : > { %v3568_v36 = vpop.eup %2492  ;;  %2508 = vrcp.f32 %v1690_v62  ;;  %v1693_v44 = vpop.xlane.xlu1 %1692 }
 0x350   : > { %v3570_v30 = vpop.eup %2494  ;;  %2510 = vrcp.f32 %v1693_v44 }
 0x351   : > { %v2497_v48 = vpop.eup %2496  ;;  %v1748_v58 = vadd.f32 %v3570_v30, %v3568_v36 }
 0x352   : > { %v1804_v27 = vmul.f32 %v2497_v48, %v3372_v13  ;;  %v1803_v42 = vmul.f32 %v2497_v48, %v3364_v8  ;;  %v3578_v50 = vpop.eup %2498  ;;  %v1696_v0 = vpop.xlane.xlu0 %1695 }
 0x353   : > { %1749 = vadd.xlane.f32.xlu0 %v1748_v58  ;;  %v3580_v41 = vpop.eup %2500  ;;  %2512 = vrcp.f32 %v1696_v0  ;;  %v3796_v0 = vld [vmem:[#allocation14_spill] sm:$0xff] }
 0x354   : > { %v1860_v60 = vpack.c.bf16 %v1804_v27, %v1802_v63  ;;  %v1859_v39 = vpack.c.bf16 %v1803_v42, %v1801_v29  ;;  %v1751_v52 = vadd.f32 %v3580_v41, %v3578_v50  ;;  %v2503_v20 = vpop.eup %2502 }
 0x355   : > { %v1806_v15 = vmul.f32 %v2503_v20, %v3390_v31  ;;  %v1805_v59 = vmul.f32 %v2503_v20, %v3388_v21  ;;  %v3798_v20 = vld [vmem:[#allocation12_spill] sm:$0xff] }
 0x356   : > { %1895 = vmatprep.subr.bf16.mxu1 %v1860_v60  ;;  %1752 = vadd.xlane.f32.xlu1 %v1751_v52 }
 0x357   : > { %v3584_v23 = vpop.eup %2504  ;;  %1896 = vmatpush1.bf16.xpose.msra.mxu1 %v1859_v39  ;;  %v1699_v8 = vpop.xlane.xlu1 %1698  ;;  %v3797_v39 = vld [vmem:[#allocation13_spill] sm:$0xff] }
 0x358   : > { %v3586_v55 = vpop.eup %2506  ;;  %2514 = vrcp.f32 %v1699_v8 }
 0x359   : > { %v2509_v13 = vpop.eup %2508  ;;  %v1754_v9 = vadd.f32 %v3586_v55, %v3584_v23 }
 0x35a   : > { %v1808_v17 = vmul.f32 %v2509_v13, %v3400_v16  ;;  %v1807_v34 = vmul.f32 %v2509_v13, %v3392_v25  ;;  %v1702_v54 = vpop.xlane.xlu0 %1701  ;;  %v2511_v56 = vpop.eup %2510 }
 0x35b   : > { %1755 = vadd.xlane.f32.xlu0 %v1754_v9  ;;  %2516 = vrcp.f32 %v1702_v54  ;;  %v1810_v14 = vmul.f32 %v2511_v56, %v3408_v40  ;;  %v1809_v25 = vmul.f32 %v2511_v56, %v3406_v11  ;;  %v3801_v56 = vld [vmem:[#allocation17_spill] sm:$0xff] }
 0x35c   : > { %v1862_v7 = vpack.c.bf16 %v1808_v17, %v1806_v15  ;;  %v1861_v4 = vpack.c.bf16 %v1807_v34, %v1805_v59  ;;  %v3799_v15 = vld [vmem:[#allocation16_spill] sm:$0xff]  ;;  %v3800_v59 = vld [vmem:[#allocation18_spill] sm:$0xff] }
 0x35d   : > { %v2513_v45 = vpop.eup %2512 }
 0x35e   : > { %1897 = vmatprep.subr.bf16.mxu1 %v1862_v7  ;;  %v1812_v31 = vmul.f32 %v2513_v45, %v3416_v19  ;;  %v1811_v16 = vmul.f32 %v2513_v45, %v3410_v22  ;;  %v3802_v45 = vld [vmem:[#allocation15_spill] sm:$0xff] }
 0x35f   : > { %1898 = vmatpush1.bf16.xpose.msra.mxu1 %v1861_v4  ;;  %v1705_v32 = vpop.xlane.xlu1 %1704 }
 0x360   : > { %v1864_v62 = vpack.c.bf16 %v1812_v31, %v1810_v14  ;;  %2518 = vrcp.f32 %v1705_v32  ;;  %v1863_v57 = vpack.c.bf16 %v1811_v16, %v1809_v25 }
 0x362   : > { %1899 = vmatprep.subr.bf16.mxu1 %v1864_v62  ;;  %v1708_v21 = vpop.xlane.xlu0 %1707  ;;  %v2515_v28 = vpop.eup %2514 }
 0x363   : > { %2520 = vrcp.f32 %v1708_v21  ;;  %v1814_v44 = vmul.f32 %v2515_v28, %v3424_v43  ;;  %v1813_v63 = vmul.f32 %v2515_v28, %v3422_v3 }
 0x365   : > { %v2517_v33 = vpop.eup %2516 }
 0x366   : > { %v1816_v40 = vmul.f32 %v2517_v33, %v3432_v47  ;;  %v1815_v58 = vmul.f32 %v2517_v33, %v3426_v61 }
 0x367   : > { %1900 = vmatpush1.bf16.xpose.msra.mxu1 %v1863_v57  ;;  %v1711_v48 = vpop.xlane.xlu1 %1710 }
 0x368   : > { %v1866_v19 = vpack.c.bf16 %v1816_v40, %v1814_v44  ;;  %2522 = vrcp.f32 %v1711_v48  ;;  %v1865_v11 = vpack.c.bf16 %v1815_v58, %v1813_v63 }
 0x36a   : > { %1901 = vmatprep.subr.bf16.mxu1 %v1866_v19  ;;  %v1714_v22 = vpop.xlane.xlu0 %1713  ;;  %v2519_v27 = vpop.eup %2518 }
 0x36b   : > { %2524 = vrcp.f32 %v1714_v22  ;;  %v1818_v42 = vmul.f32 %v2519_v27, %v3440_v38  ;;  %v1817_v8 = vmul.f32 %v2519_v27, %v3798_v20  ;;  %v3803_v22 = vld [vmem:[#allocation21_spill] sm:$0xff] }
 0x36d   : > { %v2521_v29 = vpop.eup %2520 }
 0x36e   : > { %v1820_v43 = vmul.f32 %v2521_v29, %v3796_v0  ;;  %v1819_v52 = vmul.f32 %v2521_v29, %v3797_v39  ;;  %v3805_v29 = vld [vmem:[#allocation19_spill] sm:$0xff] }
 0x36f   : > { %1902 = vmatpush1.bf16.xpose.msra.mxu1 %v1865_v11  ;;  %v1717_v60 = vpop.xlane.xlu1 %1716 }
 0x370   : > { %v1868_v47 = vpack.c.bf16 %v1820_v43, %v1818_v42  ;;  %2526 = vrcp.f32 %v1717_v60  ;;  %v1867_v3 = vpack.c.bf16 %v1819_v52, %v1817_v8  ;;  %v3806_v43 = vld [vmem:[#allocation23_spill] sm:$0xff]  ;;  %v3808_v52 = vld [vmem:[#allocation24_spill] sm:$0xff] }
 0x372   : > { %1903 = vmatprep.subr.bf16.mxu1 %v1868_v47  ;;  %v1720_v61 = vpop.xlane.xlu0 %1719  ;;  %v2523_v13 = vpop.eup %2522  ;;  %v3807_v47 = vld [vmem:[#allocation25_spill] sm:$0xff] }
 0x373   : > { %2528 = vrcp.f32 %v1720_v61  ;;  %v1822_v17 = vmul.f32 %v2523_v13, %v3799_v15  ;;  %v1821_v14 = vmul.f32 %v2523_v13, %v3802_v45  ;;  %v3809_v61 = vld [vmem:[#allocation22_spill] sm:$0xff] }
 0x375   : > { %v2525_v9 = vpop.eup %2524 }
 0x376   : > { %v1824_v38 = vmul.f32 %v2525_v9, %v3800_v59  ;;  %v1823_v7 = vmul.f32 %v2525_v9, %v3801_v56 }
 0x377   : > { %1904 = vmatpush1.bf16.xpose.msra.mxu1 %v1867_v3  ;;  %v1723_v34 = vpop.xlane.xlu1 %1722 }
 0x378   : > { %2530 = vrcp.f32 %v1723_v34  ;;  %v1870_v54 = vpack.c.bf16 %v1824_v38, %v1822_v17  ;;  %v1869_v32 = vpack.c.bf16 %v1823_v7, %v1821_v14 }
 0x379   : > { %v1726_v4 = vpop.xlane.xlu0 %1725 }
 0x37a   : > { %1905 = vmatprep.subr.bf16.mxu1 %v1870_v54  ;;  %2532 = vrcp.f32 %v1726_v4  ;;  %v2527_v31 = vpop.eup %2526 }
 0x37b   : > { %v1826_v16 = vmul.f32 %v2527_v31, %v3472_v51  ;;  %v1825_v40 = vmul.f32 %v2527_v31, %v3470_v1 }
 0x37d   : > { %v2529_v62 = vpop.eup %2528 }
 0x37e   : > { %v1828_v21 = vmul.f32 %v2529_v62, %v3480_v18  ;;  %v1827_v57 = vmul.f32 %v2529_v62, %v3474_v53  ;;  %v3804_v18 = vld [vmem:[#allocation20_spill] sm:$0xff] }
 0x37f   : > { %1906 = vmatpush1.bf16.xpose.msra.mxu1 %v1869_v32  ;;  %v1729_v25 = vpop.xlane.xlu1 %1728 }
 0x380   : > { %2534 = vrcp.f32 %v1729_v25  ;;  %v1872_v28 = vpack.c.bf16 %v1828_v21, %v1826_v16  ;;  %v1871_v19 = vpack.c.bf16 %v1827_v57, %v1825_v40 }
 0x381   : > { %v1732_v33 = vpop.xlane.xlu0 %1731 }
 0x382   : > { %v2531_v44 = vpop.eup %2530  ;;  %1907 = vmatprep.subr.bf16.mxu1 %v1872_v28  ;;  %2536 = vrcp.f32 %v1732_v33 }
 0x383   : > { %v1830_v58 = vmul.f32 %v2531_v44, %v3488_v26  ;;  %v1829_v53 = vmul.f32 %v2531_v44, %v3805_v29  ;;  %v3817_v29 = vld [vmem:[#allocation8_spill] sm:$0xff] }
 0x384   : > { %v2533_v48 = vpop.eup %2532 }
 0x385   : > { %v1832_v63 = vmul.f32 %v2533_v48, %v3803_v22  ;;  %v1831_v27 = vmul.f32 %v2533_v48, %v3804_v18  ;;  %v3813_v18 = vld [vmem:[#allocation11_spill] sm:$0xff] }
 0x387   : > { %1908 = vmatpush1.bf16.xpose.msra.mxu1 %v1871_v19  ;;  %v1874_v51 = vpack.c.bf16 %v1832_v63, %v1830_v58  ;;  %v1873_v0 = vpack.c.bf16 %v1831_v27, %v1829_v53  ;;  %v3814_v27 = vld [vmem:[#allocation9_spill] sm:$0xff] }
 0x389   : > { %1909 = vmatprep.subr.bf16.mxu1 %v1874_v51 }
 0x38a   : > { %v2535_v11 = vpop.eup %2534 }
 0x38b   : > { %v1834_v60 = vmul.f32 %v2535_v11, %v3806_v43  ;;  %v1833_v20 = vmul.f32 %v2535_v11, %v3809_v61  ;;  %v3815_v11 = vpack.c.bf16 %v3813_v18, %v3814_v27 }
 0x38c   : > { %v2537_v42 = vpop.eup %2536 }
 0x38d   : > { %v1836_v1 = vmul.f32 %v2537_v42, %v3807_v47  ;;  %v1835_v26 = vmul.f32 %v2537_v42, %v3808_v52 }
 0x38f   : > { %1910 = vmatpush1.bf16.xpose.msra.mxu1 %v1873_v0  ;;  %v1876_v39 = vpack.c.bf16 %v1836_v1, %v1834_v60  ;;  %v1875_v8 = vpack.c.bf16 %v1835_v26, %v1833_v20 }
 0x391   : > { %1911 = vmatprep.subr.bf16.mxu1 %v1876_v39 }
 0x397   : > { %1912 = vmatpush1.bf16.xpose.msra.mxu1 %v1875_v8 }
 0x3cb   : > { %v1735_v13 = vpop.xlane.xlu1 %1734 }
 0x3cc   : > { %2538 = vrcp.f32 %v1735_v13 }
 0x3ce   : > { %v1738_v3 = vpop.xlane.xlu0 %1737 }
 0x3cf   : > { %2540 = vrcp.f32 %v1738_v3 }
 0x3d3   : > { %v1741_v9 = vpop.xlane.xlu1 %1740 }
 0x3d4   : > { %2542 = vrcp.f32 %v1741_v9 }
 0x3d6   : > { %v2539_v15 = vpop.eup %2538 }
 0x3d7   : > { %v1744_v17 = vpop.xlane.xlu0 %1743  ;;  %v1838_v38 = vmul.f32 %v2539_v15, %v3524_v5  ;;  %v1837_v54 = vmul.f32 %v2539_v15, %v3522_v35 }
 0x3d8   : > { %2544 = vrcp.f32 %v1744_v17 }
 0x3d9   : > { %v2541_v59 = vpop.eup %2540 }
 0x3da   : > { %v1840_v34 = vmul.f32 %v2541_v59, %v3532_v37  ;;  %v1839_v56 = vmul.f32 %v2541_v59, %v3530_v24 }
 0x3db   : > { %v1747_v7 = vpop.xlane.xlu1 %1746 }
 0x3dc   : > { %v1878_v4 = vpack.c.bf16 %v1840_v34, %v1838_v38  ;;  %v1877_v45 = vpack.c.bf16 %v1839_v56, %v1837_v54  ;;  %2546 = vrcp.f32 %v1747_v7 }
 0x3de   : > { %1913 = vmatprep.subr.bf16.mxu1 %v1878_v4  ;;  %v2543_v31 = vpop.eup %2542 }
 0x3df   : > { %1914 = vmatpush1.bf16.xpose.msra.mxu1 %v1877_v45  ;;  %v1842_v16 = vmul.f32 %v2543_v31, %v3544_v46  ;;  %v1841_v37 = vmul.f32 %v2543_v31, %v3542_v10 }
 0x3e0   : > { %v1750_v14 = vpop.xlane.xlu0 %1749 }
 0x3e1   : > { %2548 = vrcp.f32 %v1750_v14 }
 0x3e2   : > { %v2545_v32 = vpop.eup %2544 }
 0x3e3   : > { %v1753_v62 = vpop.xlane.xlu1 %1752  ;;  %v1844_v5 = vmul.f32 %v2545_v32, %v3552_v2  ;;  %v1843_v35 = vmul.f32 %v2545_v32, %v3550_v49 }
 0x3e4   : > { %2550 = vrcp.f32 %v1753_v62 }
 0x3e5   : > { %v1880_v24 = vpack.c.bf16 %v1844_v5, %v1842_v16  ;;  %v1879_v21 = vpack.c.bf16 %v1843_v35, %v1841_v37 }
 0x3e6   : > { %v2547_v28 = vpop.eup %2546 }
 0x3e7   : > { %1915 = vmatprep.subr.bf16.mxu1 %v1880_v24  ;;  %v1846_v33 = vmul.f32 %v2547_v28, %v3564_v12  ;;  %v1845_v46 = vmul.f32 %v2547_v28, %v3562_v6  ;;  %v3810_v6 = vld [vmem:[#allocation7_spill] sm:$0xff] }
 0x3e8   : > { %v1756_v25 = vpop.xlane.xlu0 %1755  ;;  %1916 = vmatpush1.bf16.xpose.msra.mxu1 %v1879_v21 }
 0x3e9   : > { %2552 = vrcp.f32 %v1756_v25 }
 0x3eb   : > { %v2549_v57 = vpop.eup %2548 }
 0x3ec   : > { %v1848_v44 = vmul.f32 %v2549_v57, %v3570_v30  ;;  %v1847_v2 = vmul.f32 %v2549_v57, %v3568_v36  ;;  %v3811_v36 = vld [vmem:[#allocation6_spill] sm:$0xff] }
 0x3ed   : > { %v3812_v51 = vpack.c.bf16 %v3810_v6, %v3811_v36 }
 0x3ee   : > { %v1882_v10 = vpack.c.bf16 %v1848_v44, %v1846_v33  ;;  %v1881_v40 = vpack.c.bf16 %v1847_v2, %v1845_v46  ;;  %v2551_v49 = vpop.eup %2550 }
 0x3ef   : > { %v1850_v19 = vmul.f32 %v2551_v49, %v3580_v41  ;;  %v1849_v22 = vmul.f32 %v2551_v49, %v3578_v50  ;;  %v3816_v41 = vld [vmem:[#allocation10_spill] sm:$0xff] }
 0x3f0   : > { %1917 = vmatprep.subr.bf16.mxu1 %v1882_v10 }
 0x3f1   : > { %1918 = vmatpush1.bf16.xpose.msra.mxu1 %v1881_v40 }
 0x3f3   : > { %v2553_v48 = vpop.eup %2552 }
 0x3f4   : > { %v1852_v58 = vmul.f32 %v2553_v48, %v3586_v55  ;;  %v1851_v12 = vmul.f32 %v2553_v48, %v3584_v23  ;;  %v3818_v55 = vpack.c.bf16 %v3816_v41, %v3817_v29 }
 0x3f6   : > { %v1884_v30 = vpack.c.bf16 %v1852_v58, %v1850_v19  ;;  %v1883_v63 = vpack.c.bf16 %v1851_v12, %v1849_v22 }
 0x3f8   : > { %1919 = vmatprep.subr.bf16.mxu1 %v1884_v30 }
 0x3f9   : > { %1920 = vmatpush1.bf16.xpose.msra.mxu1 %v1883_v63 }
 0x400   : > { %1922 = vmatmul.mubr.bf16.vlgmr.msra.gmra.mrb[40].mxu1 %v3812_v51 }
 0x401   : > { %1931 = vmatprep.mubr.bf16.mxu1 %v3815_v11 }
 0x408   : > { %1932 = vmatmul.mubr.bf16.gmra.mrb[44].mxu1 %v3818_v55 }
 0x4d3   : > { %v1923_v50 = vpop.f32.mrb[40].mxu1 }
 0x4d4   : > { %1942 = vst [vmem:[%s300_s14] sm:$0xff] %v1923_v50  ;;  %v1925_v23 = vpop.f32.mrb[41].mxu1 }
 0x4d5   : > { %1943 = vst [vmem:[%s300_s14 + $0x8] sm:$0xff] %v1925_v23  ;;  %v1927_v53 = vpop.f32.mrb[42].mxu1 }
 0x4d6   : > { %1944 = vst [vmem:[%s300_s14 + $0x10] sm:$0xff] %v1927_v53  ;;  %v1929_v42 = vpop.f32.mrb[43].mxu1 }
 0x4d7   : > { %1945 = vst [vmem:[%s300_s14 + $0x18] sm:$0xff] %v1929_v42 }
 0x4db   : > { %v1933_v0 = vpop.f32.mrb[44].mxu1 }
 0x4dc   : > { %1946 = vst [vmem:[%s300_s14 + $0x20] sm:$0xff] %v1933_v0  ;;  %v1935_v43 = vpop.f32.mrb[45].mxu1 }
 0x4dd   : > { %1947 = vst [vmem:[%s300_s14 + $0x28] sm:$0xff] %v1935_v43  ;;  %v1937_v60 = vpop.f32.mrb[46].mxu1 }
 0x4de   : > { %1948 = vst [vmem:[%s300_s14 + $0x30] sm:$0xff] %v1937_v60  ;;  %v1939_v47 = vpop.f32.mrb[47].mxu1 }
 0x4df   : > { %1949 = vst [vmem:[%s300_s14 + $0x38] sm:$0xff] %v1939_v47 }
 0x4e0   : > { %2567 = shalt.err (!%p2564_p5)
}
 0x4e1   : > { %s2568_s8 = scalar_lea.hbm %s3654_s19, 1024  ;;  %s2572_s13 = scalar_lea.hbm %s3708_s6, 2048 }
 0x4e2   : > { %p2569_p6 = scmp.ne.s32.totalorder %s3654_s19, %s2568_s8  ;;  %p2573_p10 = scmp.lt.u32.totalorder %s3654_s19, %s3708_s6 }
 0x4e3   : > { %p2574_p11 = scmp.lt.u32.totalorder %s2572_s13, %s2568_s8  ;;  %p2576_p13 = scmp.lt.u32.totalorder %s2568_s8, %s3654_s19 }
 0x4e4   : > { %p2570_p7 = pnand %p2569_p6, %p2715_p4 }
 0x4e5   : > { %p2575_p12 = por %p2574_p11, %p2573_p10 }
 0x4e6   : > { %p2571_p9 = pneg %p2570_p7 }
 0x4e7   : > { %p2577_p0 = por %p2576_p13, %p2575_p12 }
 0x4e9   : > { %p2578_p1 = pnand %p2577_p0, %p2571_p9 }
 0x4eb   : > { %2581 = shalt.err (!%p2578_p1)
}
 0x4ec   : > { %s2638_s16 = smov 256   ;;  %s2639_s18 = smov 16  }
 0x4ed   : > { %2286 = dma.vmem_to_hbm [thread:$0]  (%p2715_p4), %s3649_s15, 1024, %s3654_s19, %s3656_s17, %s2638_s16, %s2638_s16, %s2639_s18  }
 0x4ee PF: > { %p2292_p2 = scmp.ge.s32.totalorder %s2632_s26, 2  ;;  %s1981_s24 = sand.u32 1, %s2612_s21  }
 0x4ef   : > { %s1982_s20 = scalar_lea.sflag [#allocation4], %s1981_s24 }
 0x4f0   : > { %p2289_p3 = pnand %p2292_p2, %p2722_p8 }
 0x4f2   : > { %2607 = dma.done.wait (!%p2289_p3), %s1982_s20, 1024  }
 0x4f3   : > { %2609 = vsyncadd (!%p2289_p3), %s1982_s20, 4294966272  ;;  %s19_s26 = sadd.s32 1, %s2632_s26   ;;  %s3819_s21 = smov %s2616_s22 }
 0x4f4   : > { %p16_p5 = scmp.ge.s32.totalorder %s19_s26, 4   ;;  %s3820_s22 = smov %s2620_s23 }
 0x4f5   : > { %s3821_s23 = smov %s2728_s10  ;;  %s3822_s24 = smov %s2628_s25 }
 0x4f6   : > { %s3823_s25 = smov %s3825_s29  ;;  %18 = sbr.rel (!%p16_p5) target bundleno = 4 (0x4), region = 89 }
 0x4fd   :  { %1987 = vsyncpa [#allocation4], 1 }
 0x4fe   :  { %1989 = vsyncpa [#allocation4 + $0x1], 1 }

</bundles_post_ra>
